<compile_context>
chip_gen: v6e
topology: v6e:2x2x1
jax: 0.10.0
libtpu: 0.0.40
codegen_flags: <defaults>
</compile_context>

<pallas_src>
import functools

import jax
import jax.numpy as jnp
import numpy as np
from jax.experimental import pallas as pl
from jax.experimental.pallas import tpu as pltpu


def _lrelu(x, slope=0.01):
    # max(x, slope*x) == LeakyReLU(slope) exactly for 0 < slope < 1 (2 VPU ops).
    return jnp.maximum(x, slope * x)


def _round_up(x, m):
    return (x + m - 1) // m * m


def rnn_net_at_kernel(
    state_ref,      # (TB, N*Ds)  lane-packed per-sample node features
    inp_ref,        # (TB, Di)
    ws_ref, bs_ref,             # (N*Ds, N*H) block-diagonal state_net, (1, N*H)
    wi_ref, bi_ref,             # (Di, H), (1, H)
    wa1_ref, ba1_ref,           # (H, H), (1, H)
    wa2_ref, ba2_ref,           # (1, H) row, (1, 1)
    w1_ref, b1_ref,             # (2H, 128), (1, 128)
    w2_ref, b2_ref,             # (128, 64), (1, 64)
    w3_ref, b3_ref,             # (64, Do), (1, Do)
    out_ref,        # (TB, Do)
    *, nodes, hidden,
):
    f32 = jnp.float32

    # ---- state_net over all nodes in a single MXU matmul ----
    # Block-diagonal weight maps input lanes [n*Ds, (n+1)*Ds) to output lanes
    # [n*H, (n+1)*H): per-node hidden states come out lane-packed as (TB, N*H).
    h_s1_all = _lrelu(
        jnp.dot(state_ref[...], ws_ref[...], preferred_element_type=f32)
        + bs_ref[...])                                               # (TB, N*H)

    # ---- attention path: static unroll over the N (=8) nodes ----
    wa1 = wa1_ref[...]
    ba1 = ba1_ref[...]
    wa2 = wa2_ref[...]                                               # (1, H)
    s_vals = []
    score_cols = []
    for n in range(nodes):
        h_n = h_s1_all[:, n * hidden:(n + 1) * hidden]               # (TB, H) lane slice
        s_n = _lrelu(jnp.dot(h_n, wa1, preferred_element_type=f32) + ba1)  # (TB, H)
        s_vals.append(s_n)
        # attention_net_2 (H -> 1): VPU multiply + lane reduce (MXU stays free).
        score_cols.append(jnp.sum(s_n * wa2, axis=-1, keepdims=True))       # (TB, 1)

    # Node scores lane-packed: softmax work touches (TB, N) instead of (TB, N, 1).
    scores = _lrelu(jnp.concatenate(score_cols, axis=-1) + ba2_ref[...])     # (TB, N)

    # softmax over the node axis (max-subtracted; shift-invariant, numerically safe)
    m = jnp.max(scores, axis=-1, keepdims=True)                      # (TB, 1)
    x_exp = jnp.exp(scores - m)                                      # (TB, N)
    at_w = x_exp / jnp.sum(x_exp, axis=-1, keepdims=True)            # (TB, N)

    # attention_hs = sum_n at_w[:, n] * s_val1[:, n, :]  (unrolled broadcast-FMA)
    attention_hs = at_w[:, 0:1] * s_vals[0]
    for n in range(1, nodes):
        attention_hs = attention_hs + at_w[:, n:n + 1] * s_vals[n]   # (TB, H)

    # ---- input path ----
    h_i1 = _lrelu(
        jnp.dot(inp_ref[...], wi_ref[...], preferred_element_type=f32)
        + bi_ref[...])                                               # (TB, H)

    # ---- MLP head: single matmul on the lane-concatenated features ----
    h_all = jnp.concatenate([attention_hs, h_i1], axis=-1)           # (TB, 2H)
    h_out1 = _lrelu(jnp.dot(h_all, w1_ref[...], preferred_element_type=f32)
                    + b1_ref[...])                                   # (TB, 128)
    h_out2 = _lrelu(jnp.dot(h_out1, w2_ref[...], preferred_element_type=f32)
                    + b2_ref[...])                                   # (TB, 64)
    out_ref[...] = jnp.tanh(
        jnp.dot(h_out2, w3_ref[...], preferred_element_type=f32)
        + b3_ref[...])                                               # (TB, Do)


def rnn_net_at_pallas(state, inp, params, *, tb=512):
    """state: (B, N, Ds) f32, inp: (B, Di) f32 -> (B, Do) f32."""
    B, N, Ds = state.shape
    Di = inp.shape[1]
    H = params["Ws"].shape[1]           # 64
    Do = params["W3t"].shape[1]
    f32 = jnp.float32

    # ---- batch tile selection ----
    B8 = _round_up(B, 8)
    # Keep >= 2 grid steps when the batch allows it (v7x: 2 TensorCores can each
    # take part of the "parallel" batch axis); otherwise use the requested tb
    # (default 512) to amortize the ~0.35us-per-grid-step pipeline overhead.
    tb_cap = max(8, (B8 // 2) // 8 * 8) if B8 >= 16 else 8
    TB = max(8, min(_round_up(tb, 8), tb_cap))
    B_pad = _round_up(B8, TB)

    # ---- activations: lane-pack the narrow per-node state rows ----
    state2d = state.reshape(B, N * Ds)          # contiguous -> metadata-only reshape
    if B_pad != B:                              # pad only when actually required
        state_p = jnp.zeros((B_pad, N * Ds), f32).at[:B].set(state2d)
        inp_p = jnp.zeros((B_pad, Di), f32).at[:B].set(inp)
    else:
        state_p, inp_p = state2d, inp

    # ---- weight packing ----
    # state_net as one block-diagonal (N*Ds, N*H) matmul (extra MACs on zeros are
    # negligible; saves any in-kernel relayout of the 3-wide input).
    ws_bd = jnp.zeros((N * Ds, N * H), f32)
    for n in range(N):
        ws_bd = ws_bd.at[n * Ds:(n + 1) * Ds, n * H:(n + 1) * H].set(params["Ws"])
    bs_tiled = jnp.tile(params["bs"], (1, N))                        # (1, N*H)
    # Wa2 (H,1) as a (1,H) row: kernel uses a lane reduce instead of a 1-wide matmul.
    wa2_row = params["Wa2"].reshape(1, H)

    def full_spec(arr):
        # Untiled weight: whole array is one block, same block every grid step
        # (fetched once, stays resident in VMEM).
        zeros = (0,) * arr.ndim
        return pl.BlockSpec(arr.shape, lambda b, z=zeros: z)

    weights = (ws_bd, bs_tiled,
               params["Wi"], params["bi"],
               params["Wa1"], params["ba1"],
               wa2_row, params["ba2"],
               params["W1t"], params["b1"],
               params["W2t"], params["b2"],
               params["W3t"], params["b3"])

    in_specs = [pl.BlockSpec((TB, N * Ds), lambda b: (b, 0)),
                pl.BlockSpec((TB, Di), lambda b: (b, 0))]
    in_specs += [full_spec(w) for w in weights]

    out = pl.pallas_call(
        functools.partial(rnn_net_at_kernel, nodes=N, hidden=H),
        out_shape=jax.ShapeDtypeStruct((B_pad, Do), f32),
        grid_spec=pltpu.PrefetchScalarGridSpec(
            num_scalar_prefetch=0,
            grid=(B_pad // TB,),
            in_specs=in_specs,
            # Unpadded (TB, Do) output: 12 B/sample HBM writes instead of a
            # 128-lane padded 512 B/sample slab; masked-store cost amortized
            # over the large batch tile.
            out_specs=pl.BlockSpec((TB, Do), lambda b: (b, 0)),
        ),
        compiler_params=pltpu.CompilerParams(
            dimension_semantics=("parallel",),
            vmem_limit_bytes=32 * 1024 * 1024,
        ),
    )(state_p, inp_p, *weights)
    return out if B_pad == B else out[:B]


def rnn_net_at_reference(state, inp, params):
    """Pure-JAX mirror of the PyTorch forward, for validation."""
    lrelu = lambda x: jnp.where(x >= 0, x, 0.01 * x)
    h_s1 = lrelu(state @ params["Ws"] + params["bs"])          # (B, N, 64)
    s_val1 = lrelu(h_s1 @ params["Wa1"] + params["ba1"])       # (B, N, 64)
    s_rate = lrelu(s_val1 @ params["Wa2"] + params["ba2"])     # (B, N, 1)
    x_exp = jnp.exp(s_rate)
    x_sum = jnp.sum(x_exp, axis=1)                             # (B, 1)
    at_w = x_exp / x_sum[:, :, None]                           # (B, N, 1)
    at_w = jnp.transpose(at_w, (0, 2, 1))                      # (B, 1, N)
    attention_hs = jnp.squeeze(at_w @ s_val1, axis=1)          # (B, 64)
    h_i1 = lrelu(inp @ params["Wi"] + params["bi"][0])         # (B, 64)
    h_all = jnp.concatenate([attention_hs, h_i1], axis=1)      # (B, 128)
    h_out1 = lrelu(h_all @ params["W1t"] + params["b1"][0])
    h_out2 = lrelu(h_out1 @ params["W2t"] + params["b2"][0])
    return jnp.tanh(h_out2 @ params["W3t"] + params["b3"][0])


def init_params(key, state_dim=3, input_dim=3, out_dim=3):
    """Deterministic synthetic init (kaiming-uniform-ish weights, zero GCN biases,
    small uniform Linear biases)."""
    keys = jax.random.split(key, 16)

    def ku(k, fan_in, shape):
        bound = float(np.sqrt(6.0 / fan_in))
        return jax.random.uniform(k, shape, jnp.float32, -bound, bound)

    p = {}
    # GCN layers: weight (in, out), bias zeros
    p["Ws"] = ku(keys[0], state_dim, (state_dim, 64)); p["bs"] = jnp.zeros((1, 64), jnp.float32)
    p["Wi"] = ku(keys[1], input_dim, (input_dim, 64)); p["bi"] = jnp.zeros((1, 64), jnp.float32)
    p["Wa1"] = ku(keys[2], 64, (64, 64));              p["ba1"] = jnp.zeros((1, 64), jnp.float32)
    p["Wa2"] = ku(keys[3], 64, (64, 1));               p["ba2"] = jnp.zeros((1, 1), jnp.float32)
    # attention_net_v exists in __init__ but is unused in forward -> not materialized.
    # Linear layers: store already-transposed (in, out) weights.
    p["W1t"] = ku(keys[4], 128, (128, 128)); p["b1"] = ku(keys[5], 128, (1, 128))
    p["W2t"] = ku(keys[6], 128, (128, 64));  p["b2"] = ku(keys[7], 128, (1, 64))
    p["W3t"] = ku(keys[8], 64, (64, out_dim)); p["b3"] = ku(keys[9], 64, (1, out_dim))
    return p


if __name__ == "__main__":
    state_dim, input_dim, out_dim = 3, 3, 3
    N = 8

    key = jax.random.PRNGKey(0)
    k_state, k_inp, k_params = jax.random.split(key, 3)
    params = init_params(k_params, state_dim, input_dim, out_dim)

    # Small case (single grid step, padded batch).
    B = 2
    state = jax.random.normal(k_state, (B, N, state_dim), jnp.float32)
    inp = jax.random.normal(k_inp, (B, input_dim), jnp.float32)
    out = jax.block_until_ready(rnn_net_at_pallas(state, inp, params))
    ref = jax.block_until_ready(rnn_net_at_reference(state, inp, params))
    np.testing.assert_allclose(np.asarray(out), np.asarray(ref), rtol=1e-5, atol=1e-5)

    # Multi-step batch-tiled grid + batch padding (B=20 -> TB=8, grid=3).
    B2 = 20
    state2 = jax.random.normal(jax.random.PRNGKey(1), (B2, N, state_dim), jnp.float32)
    inp2 = jax.random.normal(jax.random.PRNGKey(2), (B2, input_dim), jnp.float32)
    out2 = jax.block_until_ready(rnn_net_at_pallas(state2, inp2, params))
    ref2 = jax.block_until_ready(rnn_net_at_reference(state2, inp2, params))
    np.testing.assert_allclose(np.asarray(out2), np.asarray(ref2), rtol=1e-5, atol=1e-5)

    # Larger batch: default TB=512, B divisible by TB (no padding copies), grid=2.
    B3 = 1024
    state3 = jax.random.normal(jax.random.PRNGKey(3), (B3, N, state_dim), jnp.float32)
    inp3 = jax.random.normal(jax.random.PRNGKey(4), (B3, input_dim), jnp.float32)
    out3 = jax.block_until_ready(rnn_net_at_pallas(state3, inp3, params))
    ref3 = jax.block_until_ready(rnn_net_at_reference(state3, inp3, params))
    np.testing.assert_allclose(np.asarray(out3), np.asarray(ref3), rtol=1e-5, atol=1e-5)

    print("KERNEL_OK")
</pallas_src>

<mosaic_0001>
module attributes {stable_mosaic.version = 11 : i64} {
  func.func @rnn_net_at_kernel(%arg0: i32, %arg1: memref<8x24xf32, #tpu.memory_space<vmem>>, %arg2: memref<8x3xf32, #tpu.memory_space<vmem>>, %arg3: memref<24x512xf32, #tpu.memory_space<vmem>>, %arg4: memref<1x512xf32, #tpu.memory_space<vmem>>, %arg5: memref<3x64xf32, #tpu.memory_space<vmem>>, %arg6: memref<1x64xf32, #tpu.memory_space<vmem>>, %arg7: memref<64x64xf32, #tpu.memory_space<vmem>>, %arg8: memref<1x64xf32, #tpu.memory_space<vmem>>, %arg9: memref<1x64xf32, #tpu.memory_space<vmem>>, %arg10: memref<1x1xf32, #tpu.memory_space<vmem>>, %arg11: memref<128x128xf32, #tpu.memory_space<vmem>>, %arg12: memref<1x128xf32, #tpu.memory_space<vmem>>, %arg13: memref<128x64xf32, #tpu.memory_space<vmem>>, %arg14: memref<1x64xf32, #tpu.memory_space<vmem>>, %arg15: memref<64x3xf32, #tpu.memory_space<vmem>>, %arg16: memref<1x3xf32, #tpu.memory_space<vmem>>, %arg17: memref<8x3xf32, #tpu.memory_space<vmem>>) attributes {dimension_semantics = [#tpu.dimension_semantics<parallel>], iteration_bounds = array<i64: 1>, scalar_prefetch = 0 : i64, scratch_operands = 0 : i64, tpu.core_type = #tpu.core_type<tc>, window_params = [{transform_indices = @transform_0, window_bounds = array<i64: 8, 24>}, {transform_indices = @transform_1, window_bounds = array<i64: 8, 3>}, {pipeline_mode = #tpu.pipeline_mode<synchronous>, transform_indices = @transform_2, window_bounds = array<i64: 24, 512>}, {pipeline_mode = #tpu.pipeline_mode<synchronous>, transform_indices = @transform_3, window_bounds = array<i64: 1, 512>}, {pipeline_mode = #tpu.pipeline_mode<synchronous>, transform_indices = @transform_4, window_bounds = array<i64: 3, 64>}, {pipeline_mode = #tpu.pipeline_mode<synchronous>, transform_indices = @transform_5, window_bounds = array<i64: 1, 64>}, {pipeline_mode = #tpu.pipeline_mode<synchronous>, transform_indices = @transform_6, window_bounds = array<i64: 64, 64>}, {pipeline_mode = #tpu.pipeline_mode<synchronous>, transform_indices = @transform_7, window_bounds = array<i64: 1, 64>}, {pipeline_mode = #tpu.pipeline_mode<synchronous>, transform_indices = @transform_8, window_bounds = array<i64: 1, 64>}, {pipeline_mode = #tpu.pipeline_mode<synchronous>, transform_indices = @transform_9, window_bounds = array<i64: 1, 1>}, {pipeline_mode = #tpu.pipeline_mode<synchronous>, transform_indices = @transform_10, window_bounds = array<i64: 128, 128>}, {pipeline_mode = #tpu.pipeline_mode<synchronous>, transform_indices = @transform_11, window_bounds = array<i64: 1, 128>}, {pipeline_mode = #tpu.pipeline_mode<synchronous>, transform_indices = @transform_12, window_bounds = array<i64: 128, 64>}, {pipeline_mode = #tpu.pipeline_mode<synchronous>, transform_indices = @transform_13, window_bounds = array<i64: 1, 64>}, {pipeline_mode = #tpu.pipeline_mode<synchronous>, transform_indices = @transform_14, window_bounds = array<i64: 64, 3>}, {pipeline_mode = #tpu.pipeline_mode<synchronous>, transform_indices = @transform_15, window_bounds = array<i64: 1, 3>}, {transform_indices = @transform_16, window_bounds = array<i64: 8, 3>}]} {
    %c0 = arith.constant 0 : index
    %c0_0 = arith.constant 0 : index
    %0 = vector.load %arg1[%c0, %c0_0] : memref<8x24xf32, #tpu.memory_space<vmem>>, vector<8x24xf32>
    %c0_1 = arith.constant 0 : index
    %c0_2 = arith.constant 0 : index
    %1 = vector.load %arg3[%c0_1, %c0_2] : memref<24x512xf32, #tpu.memory_space<vmem>>, vector<24x512xf32>
    %cst = arith.constant dense<0.000000e+00> : vector<8x512xf32>
    %2 = tpu.matmul %0, %1, %cst {dimension_numbers = #tpu.dot_dimension_numbers<[1], [0], [0], [1], [0, 0, 1, 1], [], []>} : vector<8x24xf32>, vector<24x512xf32>, vector<8x512xf32> -> vector<8x512xf32>
    %c0_3 = arith.constant 0 : index
    %c0_4 = arith.constant 0 : index
    %3 = vector.load %arg4[%c0_3, %c0_4] : memref<1x512xf32, #tpu.memory_space<vmem>>, vector<1x512xf32>
    %4 = vector.broadcast %3 : vector<1x512xf32> to vector<8x512xf32>
    %5 = arith.addf %2, %4 : vector<8x512xf32>
    %cst_5 = arith.constant 0.00999999977 : f32
    %6 = vector.broadcast %cst_5 : f32 to vector<8x512xf32>
    %7 = arith.mulf %6, %5 : vector<8x512xf32>
    %8 = arith.maximumf %5, %7 : vector<8x512xf32>
    %c0_6 = arith.constant 0 : index
    %c0_7 = arith.constant 0 : index
    %9 = vector.load %arg7[%c0_6, %c0_7] : memref<64x64xf32, #tpu.memory_space<vmem>>, vector<64x64xf32>
    %c0_8 = arith.constant 0 : index
    %c0_9 = arith.constant 0 : index
    %10 = vector.load %arg8[%c0_8, %c0_9] : memref<1x64xf32, #tpu.memory_space<vmem>>, vector<1x64xf32>
    %c0_10 = arith.constant 0 : index
    %c0_11 = arith.constant 0 : index
    %11 = vector.load %arg9[%c0_10, %c0_11] : memref<1x64xf32, #tpu.memory_space<vmem>>, vector<1x64xf32>
    %12 = vector.extract_strided_slice %8 {offsets = [0, 0], sizes = [8, 64], strides = [1, 1]} : vector<8x512xf32> to vector<8x64xf32>
    %cst_12 = arith.constant dense<0.000000e+00> : vector<8x64xf32>
    %13 = tpu.matmul %12, %9, %cst_12 {dimension_numbers = #tpu.dot_dimension_numbers<[1], [0], [0], [1], [0, 0, 1, 1], [], []>} : vector<8x64xf32>, vector<64x64xf32>, vector<8x64xf32> -> vector<8x64xf32>
    %14 = vector.broadcast %10 : vector<1x64xf32> to vector<8x64xf32>
    %15 = arith.addf %13, %14 : vector<8x64xf32>
    %cst_13 = arith.constant 0.00999999977 : f32
    %16 = vector.broadcast %cst_13 : f32 to vector<8x64xf32>
    %17 = arith.mulf %16, %15 : vector<8x64xf32>
    %18 = arith.maximumf %15, %17 : vector<8x64xf32>
    %19 = vector.broadcast %11 : vector<1x64xf32> to vector<8x64xf32>
    %20 = arith.mulf %18, %19 : vector<8x64xf32>
    %cst_14 = arith.constant dense<0.000000e+00> : vector<8xf32>
    %21 = vector.multi_reduction <add>, %20, %cst_14 [1] : vector<8x64xf32> to vector<8xf32>
    %22 = vector.shape_cast %21 : vector<8xf32> to vector<8x1xf32>
    %23 = vector.extract_strided_slice %8 {offsets = [0, 64], sizes = [8, 64], strides = [1, 1]} : vector<8x512xf32> to vector<8x64xf32>
    %cst_15 = arith.constant dense<0.000000e+00> : vector<8x64xf32>
    %24 = tpu.matmul %23, %9, %cst_15 {dimension_numbers = #tpu.dot_dimension_numbers<[1], [0], [0], [1], [0, 0, 1, 1], [], []>} : vector<8x64xf32>, vector<64x64xf32>, vector<8x64xf32> -> vector<8x64xf32>
    %25 = vector.broadcast %10 : vector<1x64xf32> to vector<8x64xf32>
    %26 = arith.addf %24, %25 : vector<8x64xf32>
    %cst_16 = arith.constant 0.00999999977 : f32
    %27 = vector.broadcast %cst_16 : f32 to vector<8x64xf32>
    %28 = arith.mulf %27, %26 : vector<8x64xf32>
    %29 = arith.maximumf %26, %28 : vector<8x64xf32>
    %30 = vector.broadcast %11 : vector<1x64xf32> to vector<8x64xf32>
    %31 = arith.mulf %29, %30 : vector<8x64xf32>
    %cst_17 = arith.constant dense<0.000000e+00> : vector<8xf32>
    %32 = vector.multi_reduction <add>, %31, %cst_17 [1] : vector<8x64xf32> to vector<8xf32>
    %33 = vector.shape_cast %32 : vector<8xf32> to vector<8x1xf32>
    %34 = vector.extract_strided_slice %8 {offsets = [0, 128], sizes = [8, 64], strides = [1, 1]} : vector<8x512xf32> to vector<8x64xf32>
    %cst_18 = arith.constant dense<0.000000e+00> : vector<8x64xf32>
    %35 = tpu.matmul %34, %9, %cst_18 {dimension_numbers = #tpu.dot_dimension_numbers<[1], [0], [0], [1], [0, 0, 1, 1], [], []>} : vector<8x64xf32>, vector<64x64xf32>, vector<8x64xf32> -> vector<8x64xf32>
    %36 = vector.broadcast %10 : vector<1x64xf32> to vector<8x64xf32>
    %37 = arith.addf %35, %36 : vector<8x64xf32>
    %cst_19 = arith.constant 0.00999999977 : f32
    %38 = vector.broadcast %cst_19 : f32 to vector<8x64xf32>
    %39 = arith.mulf %38, %37 : vector<8x64xf32>
    %40 = arith.maximumf %37, %39 : vector<8x64xf32>
    %41 = vector.broadcast %11 : vector<1x64xf32> to vector<8x64xf32>
    %42 = arith.mulf %40, %41 : vector<8x64xf32>
    %cst_20 = arith.constant dense<0.000000e+00> : vector<8xf32>
    %43 = vector.multi_reduction <add>, %42, %cst_20 [1] : vector<8x64xf32> to vector<8xf32>
    %44 = vector.shape_cast %43 : vector<8xf32> to vector<8x1xf32>
    %45 = vector.extract_strided_slice %8 {offsets = [0, 192], sizes = [8, 64], strides = [1, 1]} : vector<8x512xf32> to vector<8x64xf32>
    %cst_21 = arith.constant dense<0.000000e+00> : vector<8x64xf32>
    %46 = tpu.matmul %45, %9, %cst_21 {dimension_numbers = #tpu.dot_dimension_numbers<[1], [0], [0], [1], [0, 0, 1, 1], [], []>} : vector<8x64xf32>, vector<64x64xf32>, vector<8x64xf32> -> vector<8x64xf32>
    %47 = vector.broadcast %10 : vector<1x64xf32> to vector<8x64xf32>
    %48 = arith.addf %46, %47 : vector<8x64xf32>
    %cst_22 = arith.constant 0.00999999977 : f32
    %49 = vector.broadcast %cst_22 : f32 to vector<8x64xf32>
    %50 = arith.mulf %49, %48 : vector<8x64xf32>
    %51 = arith.maximumf %48, %50 : vector<8x64xf32>
    %52 = vector.broadcast %11 : vector<1x64xf32> to vector<8x64xf32>
    %53 = arith.mulf %51, %52 : vector<8x64xf32>
    %cst_23 = arith.constant dense<0.000000e+00> : vector<8xf32>
    %54 = vector.multi_reduction <add>, %53, %cst_23 [1] : vector<8x64xf32> to vector<8xf32>
    %55 = vector.shape_cast %54 : vector<8xf32> to vector<8x1xf32>
    %56 = vector.extract_strided_slice %8 {offsets = [0, 256], sizes = [8, 64], strides = [1, 1]} : vector<8x512xf32> to vector<8x64xf32>
    %cst_24 = arith.constant dense<0.000000e+00> : vector<8x64xf32>
    %57 = tpu.matmul %56, %9, %cst_24 {dimension_numbers = #tpu.dot_dimension_numbers<[1], [0], [0], [1], [0, 0, 1, 1], [], []>} : vector<8x64xf32>, vector<64x64xf32>, vector<8x64xf32> -> vector<8x64xf32>
    %58 = vector.broadcast %10 : vector<1x64xf32> to vector<8x64xf32>
    %59 = arith.addf %57, %58 : vector<8x64xf32>
    %cst_25 = arith.constant 0.00999999977 : f32
    %60 = vector.broadcast %cst_25 : f32 to vector<8x64xf32>
    %61 = arith.mulf %60, %59 : vector<8x64xf32>
    %62 = arith.maximumf %59, %61 : vector<8x64xf32>
    %63 = vector.broadcast %11 : vector<1x64xf32> to vector<8x64xf32>
    %64 = arith.mulf %62, %63 : vector<8x64xf32>
    %cst_26 = arith.constant dense<0.000000e+00> : vector<8xf32>
    %65 = vector.multi_reduction <add>, %64, %cst_26 [1] : vector<8x64xf32> to vector<8xf32>
    %66 = vector.shape_cast %65 : vector<8xf32> to vector<8x1xf32>
    %67 = vector.extract_strided_slice %8 {offsets = [0, 320], sizes = [8, 64], strides = [1, 1]} : vector<8x512xf32> to vector<8x64xf32>
    %cst_27 = arith.constant dense<0.000000e+00> : vector<8x64xf32>
    %68 = tpu.matmul %67, %9, %cst_27 {dimension_numbers = #tpu.dot_dimension_numbers<[1], [0], [0], [1], [0, 0, 1, 1], [], []>} : vector<8x64xf32>, vector<64x64xf32>, vector<8x64xf32> -> vector<8x64xf32>
    %69 = vector.broadcast %10 : vector<1x64xf32> to vector<8x64xf32>
    %70 = arith.addf %68, %69 : vector<8x64xf32>
    %cst_28 = arith.constant 0.00999999977 : f32
    %71 = vector.broadcast %cst_28 : f32 to vector<8x64xf32>
    %72 = arith.mulf %71, %70 : vector<8x64xf32>
    %73 = arith.maximumf %70, %72 : vector<8x64xf32>
    %74 = vector.broadcast %11 : vector<1x64xf32> to vector<8x64xf32>
    %75 = arith.mulf %73, %74 : vector<8x64xf32>
    %cst_29 = arith.constant dense<0.000000e+00> : vector<8xf32>
    %76 = vector.multi_reduction <add>, %75, %cst_29 [1] : vector<8x64xf32> to vector<8xf32>
    %77 = vector.shape_cast %76 : vector<8xf32> to vector<8x1xf32>
    %78 = vector.extract_strided_slice %8 {offsets = [0, 384], sizes = [8, 64], strides = [1, 1]} : vector<8x512xf32> to vector<8x64xf32>
    %cst_30 = arith.constant dense<0.000000e+00> : vector<8x64xf32>
    %79 = tpu.matmul %78, %9, %cst_30 {dimension_numbers = #tpu.dot_dimension_numbers<[1], [0], [0], [1], [0, 0, 1, 1], [], []>} : vector<8x64xf32>, vector<64x64xf32>, vector<8x64xf32> -> vector<8x64xf32>
    %80 = vector.broadcast %10 : vector<1x64xf32> to vector<8x64xf32>
    %81 = arith.addf %79, %80 : vector<8x64xf32>
    %cst_31 = arith.constant 0.00999999977 : f32
    %82 = vector.broadcast %cst_31 : f32 to vector<8x64xf32>
    %83 = arith.mulf %82, %81 : vector<8x64xf32>
    %84 = arith.maximumf %81, %83 : vector<8x64xf32>
    %85 = vector.broadcast %11 : vector<1x64xf32> to vector<8x64xf32>
    %86 = arith.mulf %84, %85 : vector<8x64xf32>
    %cst_32 = arith.constant dense<0.000000e+00> : vector<8xf32>
    %87 = vector.multi_reduction <add>, %86, %cst_32 [1] : vector<8x64xf32> to vector<8xf32>
    %88 = vector.shape_cast %87 : vector<8xf32> to vector<8x1xf32>
    %89 = vector.extract_strided_slice %8 {offsets = [0, 448], sizes = [8, 64], strides = [1, 1]} : vector<8x512xf32> to vector<8x64xf32>
    %cst_33 = arith.constant dense<0.000000e+00> : vector<8x64xf32>
    %90 = tpu.matmul %89, %9, %cst_33 {dimension_numbers = #tpu.dot_dimension_numbers<[1], [0], [0], [1], [0, 0, 1, 1], [], []>} : vector<8x64xf32>, vector<64x64xf32>, vector<8x64xf32> -> vector<8x64xf32>
    %91 = vector.broadcast %10 : vector<1x64xf32> to vector<8x64xf32>
    %92 = arith.addf %90, %91 : vector<8x64xf32>
    %cst_34 = arith.constant 0.00999999977 : f32
    %93 = vector.broadcast %cst_34 : f32 to vector<8x64xf32>
    %94 = arith.mulf %93, %92 : vector<8x64xf32>
    %95 = arith.maximumf %92, %94 : vector<8x64xf32>
    %96 = vector.broadcast %11 : vector<1x64xf32> to vector<8x64xf32>
    %97 = arith.mulf %95, %96 : vector<8x64xf32>
    %cst_35 = arith.constant dense<0.000000e+00> : vector<8xf32>
    %98 = vector.multi_reduction <add>, %97, %cst_35 [1] : vector<8x64xf32> to vector<8xf32>
    %99 = vector.shape_cast %98 : vector<8xf32> to vector<8x1xf32>
    %100 = tpu.concatenate %22, %33, %44, %55, %66, %77, %88, %99 in 1 : vector<8x1xf32>, vector<8x1xf32>, vector<8x1xf32>, vector<8x1xf32>, vector<8x1xf32>, vector<8x1xf32>, vector<8x1xf32>, vector<8x1xf32> -> vector<8x8xf32>
    %c0_36 = arith.constant 0 : index
    %c0_37 = arith.constant 0 : index
    %101 = vector.load %arg10[%c0_36, %c0_37] : memref<1x1xf32, #tpu.memory_space<vmem>>, vector<1x1xf32>
    %102 = vector.broadcast %101 : vector<1x1xf32> to vector<8x8xf32>
    %103 = arith.addf %100, %102 : vector<8x8xf32>
    %cst_38 = arith.constant 0.00999999977 : f32
    %104 = vector.broadcast %cst_38 : f32 to vector<8x8xf32>
    %105 = arith.mulf %104, %103 : vector<8x8xf32>
    %106 = arith.maximumf %103, %105 : vector<8x8xf32>
    %cst_39 = arith.constant dense<0xFF800000> : vector<8xf32>
    %107 = vector.multi_reduction <maximumf>, %106, %cst_39 [1] : vector<8x8xf32> to vector<8xf32>
    %108 = vector.shape_cast %107 : vector<8xf32> to vector<8x1xf32>
    %109 = vector.broadcast %108 : vector<8x1xf32> to vector<8x8xf32>
    %110 = arith.subf %106, %109 : vector<8x8xf32>
    %111 = math.exp %110 : vector<8x8xf32>
    %cst_40 = arith.constant dense<0.000000e+00> : vector<8xf32>
    %112 = vector.multi_reduction <add>, %111, %cst_40 [1] : vector<8x8xf32> to vector<8xf32>
    %113 = vector.shape_cast %112 : vector<8xf32> to vector<8x1xf32>
    %114 = vector.broadcast %113 : vector<8x1xf32> to vector<8x8xf32>
    %115 = arith.divf %111, %114 : vector<8x8xf32>
    %116 = vector.extract_strided_slice %115 {offsets = [0, 0], sizes = [8, 1], strides = [1, 1]} : vector<8x8xf32> to vector<8x1xf32>
    %117 = vector.broadcast %116 : vector<8x1xf32> to vector<8x64xf32>
    %118 = arith.mulf %117, %18 : vector<8x64xf32>
    %119 = vector.extract_strided_slice %115 {offsets = [0, 1], sizes = [8, 1], strides = [1, 1]} : vector<8x8xf32> to vector<8x1xf32>
    %120 = vector.broadcast %119 : vector<8x1xf32> to vector<8x64xf32>
    %121 = arith.mulf %120, %29 : vector<8x64xf32>
    %122 = arith.addf %118, %121 : vector<8x64xf32>
    %123 = vector.extract_strided_slice %115 {offsets = [0, 2], sizes = [8, 1], strides = [1, 1]} : vector<8x8xf32> to vector<8x1xf32>
    %124 = vector.broadcast %123 : vector<8x1xf32> to vector<8x64xf32>
    %125 = arith.mulf %124, %40 : vector<8x64xf32>
    %126 = arith.addf %122, %125 : vector<8x64xf32>
    %127 = vector.extract_strided_slice %115 {offsets = [0, 3], sizes = [8, 1], strides = [1, 1]} : vector<8x8xf32> to vector<8x1xf32>
    %128 = vector.broadcast %127 : vector<8x1xf32> to vector<8x64xf32>
    %129 = arith.mulf %128, %51 : vector<8x64xf32>
    %130 = arith.addf %126, %129 : vector<8x64xf32>
    %131 = vector.extract_strided_slice %115 {offsets = [0, 4], sizes = [8, 1], strides = [1, 1]} : vector<8x8xf32> to vector<8x1xf32>
    %132 = vector.broadcast %131 : vector<8x1xf32> to vector<8x64xf32>
    %133 = arith.mulf %132, %62 : vector<8x64xf32>
    %134 = arith.addf %130, %133 : vector<8x64xf32>
    %135 = vector.extract_strided_slice %115 {offsets = [0, 5], sizes = [8, 1], strides = [1, 1]} : vector<8x8xf32> to vector<8x1xf32>
    %136 = vector.broadcast %135 : vector<8x1xf32> to vector<8x64xf32>
    %137 = arith.mulf %136, %73 : vector<8x64xf32>
    %138 = arith.addf %134, %137 : vector<8x64xf32>
    %139 = vector.extract_strided_slice %115 {offsets = [0, 6], sizes = [8, 1], strides = [1, 1]} : vector<8x8xf32> to vector<8x1xf32>
    %140 = vector.broadcast %139 : vector<8x1xf32> to vector<8x64xf32>
    %141 = arith.mulf %140, %84 : vector<8x64xf32>
    %142 = arith.addf %138, %141 : vector<8x64xf32>
    %143 = vector.extract_strided_slice %115 {offsets = [0, 7], sizes = [8, 1], strides = [1, 1]} : vector<8x8xf32> to vector<8x1xf32>
    %144 = vector.broadcast %143 : vector<8x1xf32> to vector<8x64xf32>
    %145 = arith.mulf %144, %95 : vector<8x64xf32>
    %146 = arith.addf %142, %145 : vector<8x64xf32>
    %c0_41 = arith.constant 0 : index
    %c0_42 = arith.constant 0 : index
    %147 = vector.load %arg2[%c0_41, %c0_42] : memref<8x3xf32, #tpu.memory_space<vmem>>, vector<8x3xf32>
    %c0_43 = arith.constant 0 : index
    %c0_44 = arith.constant 0 : index
    %148 = vector.load %arg5[%c0_43, %c0_44] : memref<3x64xf32, #tpu.memory_space<vmem>>, vector<3x64xf32>
    %cst_45 = arith.constant dense<0.000000e+00> : vector<8x64xf32>
    %149 = tpu.matmul %147, %148, %cst_45 {dimension_numbers = #tpu.dot_dimension_numbers<[1], [0], [0], [1], [0, 0, 1, 1], [], []>} : vector<8x3xf32>, vector<3x64xf32>, vector<8x64xf32> -> vector<8x64xf32>
    %c0_46 = arith.constant 0 : index
    %c0_47 = arith.constant 0 : index
    %150 = vector.load %arg6[%c0_46, %c0_47] : memref<1x64xf32, #tpu.memory_space<vmem>>, vector<1x64xf32>
    %151 = vector.broadcast %150 : vector<1x64xf32> to vector<8x64xf32>
    %152 = arith.addf %149, %151 : vector<8x64xf32>
    %cst_48 = arith.constant 0.00999999977 : f32
    %153 = vector.broadcast %cst_48 : f32 to vector<8x64xf32>
    %154 = arith.mulf %153, %152 : vector<8x64xf32>
    %155 = arith.maximumf %152, %154 : vector<8x64xf32>
    %156 = tpu.concatenate %146, %155 in 1 : vector<8x64xf32>, vector<8x64xf32> -> vector<8x128xf32>
    %c0_49 = arith.constant 0 : index
    %c0_50 = arith.constant 0 : index
    %157 = vector.load %arg11[%c0_49, %c0_50] : memref<128x128xf32, #tpu.memory_space<vmem>>, vector<128x128xf32>
    %cst_51 = arith.constant dense<0.000000e+00> : vector<8x128xf32>
    %158 = tpu.matmul %156, %157, %cst_51 {dimension_numbers = #tpu.dot_dimension_numbers<[1], [0], [0], [1], [0, 0, 1, 1], [], []>} : vector<8x128xf32>, vector<128x128xf32>, vector<8x128xf32> -> vector<8x128xf32>
    %c0_52 = arith.constant 0 : index
    %c0_53 = arith.constant 0 : index
    %159 = vector.load %arg12[%c0_52, %c0_53] : memref<1x128xf32, #tpu.memory_space<vmem>>, vector<1x128xf32>
    %160 = vector.broadcast %159 : vector<1x128xf32> to vector<8x128xf32>
    %161 = arith.addf %158, %160 : vector<8x128xf32>
    %cst_54 = arith.constant 0.00999999977 : f32
    %162 = vector.broadcast %cst_54 : f32 to vector<8x128xf32>
    %163 = arith.mulf %162, %161 : vector<8x128xf32>
    %164 = arith.maximumf %161, %163 : vector<8x128xf32>
    %c0_55 = arith.constant 0 : index
    %c0_56 = arith.constant 0 : index
    %165 = vector.load %arg13[%c0_55, %c0_56] : memref<128x64xf32, #tpu.memory_space<vmem>>, vector<128x64xf32>
    %cst_57 = arith.constant dense<0.000000e+00> : vector<8x64xf32>
    %166 = tpu.matmul %164, %165, %cst_57 {dimension_numbers = #tpu.dot_dimension_numbers<[1], [0], [0], [1], [0, 0, 1, 1], [], []>} : vector<8x128xf32>, vector<128x64xf32>, vector<8x64xf32> -> vector<8x64xf32>
    %c0_58 = arith.constant 0 : index
    %c0_59 = arith.constant 0 : index
    %167 = vector.load %arg14[%c0_58, %c0_59] : memref<1x64xf32, #tpu.memory_space<vmem>>, vector<1x64xf32>
    %168 = vector.broadcast %167 : vector<1x64xf32> to vector<8x64xf32>
    %169 = arith.addf %166, %168 : vector<8x64xf32>
    %cst_60 = arith.constant 0.00999999977 : f32
    %170 = vector.broadcast %cst_60 : f32 to vector<8x64xf32>
    %171 = arith.mulf %170, %169 : vector<8x64xf32>
    %172 = arith.maximumf %169, %171 : vector<8x64xf32>
    %c0_61 = arith.constant 0 : index
    %c0_62 = arith.constant 0 : index
    %173 = vector.load %arg15[%c0_61, %c0_62] : memref<64x3xf32, #tpu.memory_space<vmem>>, vector<64x3xf32>
    %cst_63 = arith.constant dense<0.000000e+00> : vector<8x3xf32>
    %174 = tpu.matmul %172, %173, %cst_63 {dimension_numbers = #tpu.dot_dimension_numbers<[1], [0], [0], [1], [0, 0, 1, 1], [], []>} : vector<8x64xf32>, vector<64x3xf32>, vector<8x3xf32> -> vector<8x3xf32>
    %c0_64 = arith.constant 0 : index
    %c0_65 = arith.constant 0 : index
    %175 = vector.load %arg16[%c0_64, %c0_65] : memref<1x3xf32, #tpu.memory_space<vmem>>, vector<1x3xf32>
    %176 = vector.broadcast %175 : vector<1x3xf32> to vector<8x3xf32>
    %177 = arith.addf %174, %176 : vector<8x3xf32>
    %178 = math.tanh %177 : vector<8x3xf32>
    %c0_66 = arith.constant 0 : index
    %c0_67 = arith.constant 0 : index
    %179 = vector.load %arg17[%c0_66, %c0_67] : memref<8x3xf32, #tpu.memory_space<vmem>>, vector<8x3xf32>
    tpu.vector_store %arg17[%c0_66, %c0_67], %178 {strides = array<i32>} : memref<8x3xf32, #tpu.memory_space<vmem>>, vector<8x3xf32>,
    return
  }
  func.func @transform_0(%arg0: i32) -> (i32, i32) {
    %c0_i32 = arith.constant 0 : i32
    %c0_i32_0 = arith.constant 0 : i32
    return %arg0, %c0_i32 : i32, i32
  }
  func.func @transform_1(%arg0: i32) -> (i32, i32) {
    %c0_i32 = arith.constant 0 : i32
    %c0_i32_0 = arith.constant 0 : i32
    return %arg0, %c0_i32 : i32, i32
  }
  func.func @transform_2(%arg0: i32) -> (i32, i32) {
    %c0_i32 = arith.constant 0 : i32
    %c0_i32_0 = arith.constant 0 : i32
    %c0_i32_1 = arith.constant 0 : i32
    return %c0_i32, %c0_i32_0 : i32, i32
  }
  func.func @transform_3(%arg0: i32) -> (i32, i32) {
    %c0_i32 = arith.constant 0 : i32
    %c0_i32_0 = arith.constant 0 : i32
    %c0_i32_1 = arith.constant 0 : i32
    return %c0_i32, %c0_i32_0 : i32, i32
  }
  func.func @transform_4(%arg0: i32) -> (i32, i32) {
    %c0_i32 = arith.constant 0 : i32
    %c0_i32_0 = arith.constant 0 : i32
    %c0_i32_1 = arith.constant 0 : i32
    return %c0_i32, %c0_i32_0 : i32, i32
  }
  func.func @transform_5(%arg0: i32) -> (i32, i32) {
    %c0_i32 = arith.constant 0 : i32
    %c0_i32_0 = arith.constant 0 : i32
    %c0_i32_1 = arith.constant 0 : i32
    return %c0_i32, %c0_i32_0 : i32, i32
  }
  func.func @transform_6(%arg0: i32) -> (i32, i32) {
    %c0_i32 = arith.constant 0 : i32
    %c0_i32_0 = arith.constant 0 : i32
    %c0_i32_1 = arith.constant 0 : i32
    return %c0_i32, %c0_i32_0 : i32, i32
  }
  func.func @transform_7(%arg0: i32) -> (i32, i32) {
    %c0_i32 = arith.constant 0 : i32
    %c0_i32_0 = arith.constant 0 : i32
    %c0_i32_1 = arith.constant 0 : i32
    return %c0_i32, %c0_i32_0 : i32, i32
  }
  func.func @transform_8(%arg0: i32) -> (i32, i32) {
    %c0_i32 = arith.constant 0 : i32
    %c0_i32_0 = arith.constant 0 : i32
    %c0_i32_1 = arith.constant 0 : i32
    return %c0_i32, %c0_i32_0 : i32, i32
  }
  func.func @transform_9(%arg0: i32) -> (i32, i32) {
    %c0_i32 = arith.constant 0 : i32
    %c0_i32_0 = arith.constant 0 : i32
    %c0_i32_1 = arith.constant 0 : i32
    return %c0_i32, %c0_i32_0 : i32, i32
  }
  func.func @transform_10(%arg0: i32) -> (i32, i32) {
    %c0_i32 = arith.constant 0 : i32
    %c0_i32_0 = arith.constant 0 : i32
    %c0_i32_1 = arith.constant 0 : i32
    return %c0_i32, %c0_i32_0 : i32, i32
  }
  func.func @transform_11(%arg0: i32) -> (i32, i32) {
    %c0_i32 = arith.constant 0 : i32
    %c0_i32_0 = arith.constant 0 : i32
    %c0_i32_1 = arith.constant 0 : i32
    return %c0_i32, %c0_i32_0 : i32, i32
  }
  func.func @transform_12(%arg0: i32) -> (i32, i32) {
    %c0_i32 = arith.constant 0 : i32
    %c0_i32_0 = arith.constant 0 : i32
    %c0_i32_1 = arith.constant 0 : i32
    return %c0_i32, %c0_i32_0 : i32, i32
  }
  func.func @transform_13(%arg0: i32) -> (i32, i32) {
    %c0_i32 = arith.constant 0 : i32
    %c0_i32_0 = arith.constant 0 : i32
    %c0_i32_1 = arith.constant 0 : i32
    return %c0_i32, %c0_i32_0 : i32, i32
  }
  func.func @transform_14(%arg0: i32) -> (i32, i32) {
    %c0_i32 = arith.constant 0 : i32
    %c0_i32_0 = arith.constant 0 : i32
    %c0_i32_1 = arith.constant 0 : i32
    return %c0_i32, %c0_i32_0 : i32, i32
  }
  func.func @transform_15(%arg0: i32) -> (i32, i32) {
    %c0_i32 = arith.constant 0 : i32
    %c0_i32_0 = arith.constant 0 : i32
    %c0_i32_1 = arith.constant 0 : i32
    return %c0_i32, %c0_i32_0 : i32, i32
  }
  func.func @transform_16(%arg0: i32) -> (i32, i32) {
    %c0_i32 = arith.constant 0 : i32
    %c0_i32_0 = arith.constant 0 : i32
    return %arg0, %c0_i32 : i32, i32
  }
}

</mosaic_0001>

<bundles_post_ra>
// kernel: tpu_custom_call.1
= control target key start
LH: loop header
LB: loop body
LE: loop exit
PB: predicated region body
PF: predicated region fallthrough
CT: control target
= control target key end

     0   :  { %s2661_s0 = inlined_call_operand.hbm [shape: f32[8,24], index: 0, kind: input, shape index: {}]   ;;  %s2662_s1 = inlined_call_operand.vmem [shape: f32[8,3], index: 1, kind: input, shape index: {}]   ;;  %s2663_s2 = inlined_call_operand.vmem [shape: f32[24,512], index: 2, kind: input, shape index: {}]   ;;  %s2664_s3 = inlined_call_operand.vmem [shape: f32[1,512], index: 3, kind: input, shape index: {}]   ;;  %s2665_s4 = inlined_call_operand.hbm [shape: f32[3,64], index: 4, kind: input, shape index: {}]   ;;  %s2666_s5 = inlined_call_operand.vmem [shape: f32[1,64], index: 5, kind: input, shape index: {}]   ;;  %s2667_s6 = inlined_call_operand.hbm [shape: f32[64,64], index: 6, kind: input, shape index: {}]   ;;  %s2668_s7 = inlined_call_operand.hbm [shape: f32[1,64], index: 7, kind: input, shape index: {}]   ;;  %s2669_s8 = inlined_call_operand.hbm [shape: f32[1,64], index: 8, kind: input, shape index: {}]   ;;  %s2670_s9 = inlined_call_operand.<no memory space> [shape: f32[1,1], index: 9, kind: input, shape index: {}]   ;;  %s2671_s10 = inlined_call_operand.vmem [shape: f32[128,128], index: 10, kind: input, shape index: {}]   ;;  %s2672_s11 = inlined_call_operand.hbm [shape: f32[1,128], index: 11, kind: input, shape index: {}]   ;;  %s2673_s12 = inlined_call_operand.vmem [shape: f32[128,64], index: 12, kind: input, shape index: {}]   ;;  %s2674_s13 = inlined_call_operand.hbm [shape: f32[1,64], index: 13, kind: input, shape index: {}]   ;;  %s2675_s14 = inlined_call_operand.vmem [shape: f32[64,3], index: 14, kind: input, shape index: {}]   ;;  %s2676_s15 = inlined_call_operand.hbm [shape: f32[1,3], index: 15, kind: input, shape index: {}]   ;;  %s2677_s16 = inlined_call_operand.vmem [shape: f32[8,3], index: 16, kind: output, shape index: {}]  }
   0x1   :  { %2678 = sst [smem:[#allocation21_spill]] %s2661_s0  ;;  %v21_v0 = vstv %s2670_s9 }
   0x2   :  { %22 = vst [vmem:[#allocation2] sm:$0x1] %v21_v0 }
   0x3   :  { %23 = vsyncpa [#allocation4], 0 }
   0x4   :  { %24 = vsyncpa [#allocation6], 0 }
   0x5   :  { %25 = vsyncpa [#allocation9], 0 }
   0x6   :  { %26 = vsyncpa [#allocation12], 0 }
   0x7   :  { %27 = vsyncpa [#allocation15], 0  ;;  %s2057_s23 = smov [#allocation5]   ;;  %s2058_s25 = smov [#allocation8]  }
   0x8   :  { %s50_s24 = sshll.u32 %s2057_s23, 4  ;;  %s74_s26 = sshll.u32 %s2058_s25, 4  ;;  %s51_s24 = int_to_ptr.vmem [resolvable:$true] %s50_s24  ;;  %s75_s26 = int_to_ptr.vmem [resolvable:$true] %s74_s26 }
   0x9   :  { %s1895_s27 = scalar_lea.vmem %s51_s24, 64  ;;  %p1900_p1 = scmp.lt.s32.totalorder %s51_s24, %s51_s24 }
   0xa   :  { %p1896_p0 = scmp.ne.s32.totalorder %s51_s24, %s1895_s27  ;;  %p1901_p2 = scmp.lt.s32.totalorder %s1895_s27, %s1895_s27 }
   0xc   :  { %p1902_p3 = por %p1901_p2, %p1900_p1 }
   0xe   :  { %p1903_p4 = pnand %p1902_p3, %p1896_p0 }
  0x10   :  { %1906 = shalt.err (!%p1903_p4)
}
  0x11   :  { %53 = dma.hbm_to_vmem [thread:$0]  %s2665_s4, 64, %s51_s24, [#allocation6]  }
  0x12   :  { %s1915_s29 = scalar_lea.vmem %s75_s26, 16  ;;  %s1919_s30 = scalar_lea.vmem %s75_s26, 32 }
  0x13   :  { %p1916_p5 = scmp.ne.s32.totalorder %s75_s26, %s1915_s29  ;;  %p1920_p6 = scmp.lt.s32.totalorder %s75_s26, %s75_s26 }
  0x14   :  { %p1921_p7 = scmp.lt.s32.totalorder %s1919_s30, %s1915_s29 }
  0x16   :  { %p1922_p8 = por %p1921_p7, %p1920_p6 }
  0x18   :  { %p1923_p9 = pnand %p1922_p8, %p1916_p5 }
  0x1a   :  { %1926 = shalt.err (!%p1923_p9)
}
  0x1b   :  { %77 = dma.hbm_to_vmem [thread:$0]  %s2668_s7, 16, %s75_s26, [#allocation9]  }
  0x1c   :  { %s2059_s18 = smov [#allocation11]   ;;  %s2060_s20 = smov [#allocation3]  }
  0x1d   :  { %s98_s19 = sshll.u32 %s2059_s18, 4  ;;  %s34_s21 = sshll.u32 %s2060_s20, 4  ;;  %s99_s19 = int_to_ptr.vmem [resolvable:$true] %s98_s19  ;;  %s35_s21 = int_to_ptr.vmem [resolvable:$true] %s34_s21 }
  0x1e   :  { %s1935_s22 = scalar_lea.vmem %s99_s19, 16  ;;  %s1939_s4 = scalar_lea.vmem %s99_s19, 32 }
  0x1f   :  { %p1936_p10 = scmp.ne.s32.totalorder %s99_s19, %s1935_s22  ;;  %p1940_p11 = scmp.lt.s32.totalorder %s99_s19, %s99_s19 }
  0x20   :  { %p1941_p12 = scmp.lt.s32.totalorder %s1939_s4, %s1935_s22 }
  0x22   :  { %p1942_p13 = por %p1941_p12, %p1940_p11 }
  0x24   :  { %p1943_p0 = pnand %p1942_p13, %p1936_p10 }
  0x26   :  { %1946 = shalt.err (!%p1943_p0)
}
  0x27   :  { %101 = dma.hbm_to_vmem [thread:$0]  %s2672_s11, 16, %s99_s19, [#allocation12]  }
  0x28   :  { %s1955_s25 = scalar_lea.vmem %s35_s21, 128  ;;  %p1960_p2 = scmp.lt.s32.totalorder %s35_s21, %s35_s21 }
  0x29   :  { %p1956_p1 = scmp.ne.s32.totalorder %s35_s21, %s1955_s25  ;;  %p1961_p3 = scmp.lt.s32.totalorder %s1955_s25, %s1955_s25 }
  0x2b   :  { %p1962_p4 = por %p1961_p3, %p1960_p2 }
  0x2d   :  { %p1963_p5 = pnand %p1962_p4, %p1956_p1 }
  0x2f   :  { %1966 = shalt.err (!%p1963_p5)
}
  0x30   :  { %s2679_s27 = sld [smem:[#allocation21_spill]]  ;;  %s2061_s9 = smov [#allocation7]  }
  0x31   :  { %s61_s28 = sshll.u32 %s2061_s9, 4  ;;  %s62_s28 = int_to_ptr.vmem [resolvable:$true] %s61_s28 }
  0x32   :  { %s1975_s29 = scalar_lea.vmem %s62_s28, 1024  ;;  %p1980_p7 = scmp.lt.s32.totalorder %s62_s28, %s62_s28 }
  0x33   :  { %p1976_p6 = scmp.ne.s32.totalorder %s62_s28, %s1975_s29  ;;  %p1981_p8 = scmp.lt.s32.totalorder %s1975_s29, %s1975_s29 }
  0x35   :  { %p1982_p9 = por %p1981_p8, %p1980_p7 }
  0x36   :  { %37 = dma.hbm_to_vmem [thread:$0]  %s2679_s27, 128, %s35_s21, [#allocation4]  }
  0x37   :  { %p1983_p10 = pnand %p1982_p9, %p1976_p6 }
  0x39   :  { %1986 = shalt.err (!%p1983_p10)
}
  0x3a   :  { %s2062_s11 = smov 128   ;;  %s2063_s30 = smov 8  }
  0x3b   :  { %67 = dma.hbm_to_vmem [thread:$0]  %s2667_s6, 1024, %s62_s28, [#allocation6], %s2062_s11, %s2062_s11, %s2063_s30  }
  0x3c   :  { %s2064_s18 = smov [#allocation10]   ;;  %s2065_s20 = smov [#allocation13]  }
  0x3d   :  { %s84_s19 = sshll.u32 %s2064_s18, 4  ;;  %s110_s21 = sshll.u32 %s2065_s20, 4  ;;  %s85_s19 = int_to_ptr.vmem [resolvable:$true] %s84_s19  ;;  %s111_s21 = int_to_ptr.vmem [resolvable:$true] %s110_s21 }
  0x3e   :  { %s1995_s22 = scalar_lea.vmem %s85_s19, 16  ;;  %s1999_s4 = scalar_lea.vmem %s85_s19, 32 }
  0x3f   :  { %p1996_p11 = scmp.ne.s32.totalorder %s85_s19, %s1995_s22  ;;  %p2000_p12 = scmp.lt.s32.totalorder %s85_s19, %s85_s19 }
  0x40   :  { %p2001_p13 = scmp.lt.s32.totalorder %s1999_s4, %s1995_s22 }
  0x42   :  { %p2002_p0 = por %p2001_p13, %p2000_p12 }
  0x44   :  { %p2003_p1 = pnand %p2002_p0, %p1996_p11 }
  0x46   :  { %2006 = shalt.err (!%p2003_p1)
}
  0x47   :  { %87 = dma.hbm_to_vmem [thread:$0]  %s2669_s8, 16, %s85_s19, [#allocation9]  }
  0x48   :  { %s2015_s25 = scalar_lea.vmem %s111_s21, 16  ;;  %s2019_s6 = scalar_lea.vmem %s111_s21, 32 }
  0x49   :  { %p2016_p2 = scmp.ne.s32.totalorder %s111_s21, %s2015_s25  ;;  %p2020_p3 = scmp.lt.s32.totalorder %s111_s21, %s111_s21 }
  0x4a   :  { %p2021_p4 = scmp.lt.s32.totalorder %s2019_s6, %s2015_s25 }
  0x4c   :  { %p2022_p5 = por %p2021_p4, %p2020_p3 }
  0x4e   :  { %p2023_p6 = pnand %p2022_p5, %p2016_p2 }
  0x50   :  { %2026 = shalt.err (!%p2023_p6)
}
  0x51   :  { %113 = dma.hbm_to_vmem [thread:$0]  %s2674_s13, 16, %s111_s21, [#allocation12]  }
  0x52   :  { %s2066_s27 = smov [#allocation14]  }
  0x53   :  { %s122_s9 = sshll.u32 %s2066_s27, 4  ;;  %s123_s9 = int_to_ptr.vmem [resolvable:$true] %s122_s9 }
  0x54   :  { %s2035_s28 = scalar_lea.vmem %s123_s9, 16  ;;  %s2039_s29 = scalar_lea.vmem %s123_s9, 32 }
  0x55   :  { %p2036_p7 = scmp.ne.s32.totalorder %s123_s9, %s2035_s28  ;;  %p2040_p8 = scmp.lt.s32.totalorder %s123_s9, %s123_s9 }
  0x56   :  { %p2041_p9 = scmp.lt.s32.totalorder %s2039_s29, %s2035_s28 }
  0x58   :  { %p2042_p10 = por %p2041_p9, %p2040_p8 }
  0x5a   :  { %p2043_p11 = pnand %p2042_p10, %p2036_p7 }
  0x5c   :  { %2046 = shalt.err (!%p2043_p11)
}
  0x5d   :  { %125 = dma.hbm_to_vmem [thread:$0]  %s2676_s15, 16, %s123_s9, [#allocation15]  }
  0x5e   :  { %2047 = dma.done.wait [#allocation4], 128  }
  0x5f   :  { %2048 = vsyncadd [#allocation4], 4294967168 }
  0x60   :  { %2049 = dma.done.wait [#allocation6], 1088  }
  0x61   :  { %2050 = vsyncadd [#allocation6], 4294966208 }
  0x62   :  { %2051 = dma.done.wait [#allocation9], 32  }
  0x63   :  { %2052 = vsyncadd [#allocation9], 4294967264 }
  0x64   :  { %2053 = dma.done.wait [#allocation12], 32  }
  0x65   :  { %2054 = vsyncadd [#allocation12], 4294967264 }
  0x66   :  { %2055 = dma.done.wait [#allocation15], 16  }
  0x67   :  { %2056 = vsyncadd [#allocation15], 4294967280  ;;  %v2067_v1 = vmov 0.0   ;;  %v160_v2 = vld [vmem:[%s2663_s2 + $0x48] sm:$0xff]  ;;  %v159_v3 = vld [vmem:[%s2663_s2 + $0x40] sm:$0xff]  ;;  %vm185_vm0 = vcmask 195584   ;;  %v165_v23 = vlaneseq }
  0x68   :  { %253 = vmatprep.mubr.f32.mxu0 %v2067_v1  ;;  %1623 = vmatprep.subr.mxu1 %v2067_v1  ;;  %v156_v4 = vld [vmem:[%s2663_s2 + $0x28] sm:$0xff]  ;;  %v155_v5 = vld [vmem:[%s2663_s2 + $0x20] sm:$0xff]  ;;  %v162_v9 = vld [vmem:[%s2663_s2 + $0x58] sm:$0xff]  ;;  %vm2068_vm1 = vmmov 0   ;;  %vm355_vm2 = vcmask 523264   ;;  %s2069_s15 = smov 64  }
  0x69   :  { %215 = vmatprep.subr.mxu0 %v160_v2  ;;  %v152_v6 = vld [vmem:[%s2663_s2 + $0x8] sm:$0xff]  ;;  %v151_v7 = vld [vmem:[%s2663_s2] sm:$0xff]  ;;  %v161_v11 = vld [vmem:[%s2663_s2 + $0x50] sm:$0xff]  ;;  %1639 = vmatprep.mubr.msk.f32.mxu1 %vm2068_vm1, %v2067_v1  ;;  %v166_v24 = vshrl.u32 %v165_v23, 7  ;;  %vm998_vm3 = vcmask 7168   ;;  %vm1000_vm4 = vcmask 15360  }
  0x6a   :  { %216 = vmatpush1.msra.mxu0 %v159_v3  ;;  %v150_v8 = vld [vmem:[#allocation3] sm:$0xff]  ;;  %v158_v12 = vld [vmem:[%s2663_s2 + $0x38] sm:$0xff]  ;;  %v157_v13 = vld [vmem:[%s2663_s2 + $0x30] sm:$0xff]  ;;  %vm1002_vm5 = vcmask 23552   ;;  %vm1004_vm6 = vcmask 31744   ;;  %vm1006_vm7 = vcmask 39936  }
  0x6b   :  { %217 = vmatprep.subr.mxu0 %v156_v4  ;;  %v2213_v10 = vld [vmem:[#allocation7 + $0x38] sm:$0xff]  ;;  %v154_v14 = vld [vmem:[%s2663_s2 + $0x18] sm:$0xff]  ;;  %v153_v16 = vld [vmem:[%s2663_s2 + $0x10] sm:$0xff]  ;;  %v167_v25 = vsub.s32 0, %v166_v24  ;;  %v171_v27 = vsub.s32 1, %v166_v24  ;;  %v175_v30 = vsub.s32 2, %v166_v24 }
  0x6c   :  { %218 = vmatpush1.msra.mxu0 %v155_v5  ;;  %1624 = vmatpush3.msra.mxu1 %v2213_v10  ;;  %v2231_v15 = vld [vmem:[#allocation7 + $0x30] sm:$0xff]  ;;  %v2237_v17 = vld [vmem:[#allocation7 + $0x28] sm:$0xff]  ;;  %v2244_v18 = vld [vmem:[#allocation7 + $0x20] sm:$0xff]  ;;  %v179_v33 = vsub.s32 3, %v166_v24  ;;  %vm1008_vm8 = vcmask 48128   ;;  %vm1010_vm9 = vcmask 56320  }
  0x6d   :  { %219 = vmatprep.subr.mxu0 %v152_v6  ;;  %1625 = vmatprep.subr.mxu1 %v2067_v1  ;;  %v2249_v19 = vld [vmem:[#allocation7 + $0x18] sm:$0xff]  ;;  %v2262_v20 = vld [vmem:[#allocation7 + $0x10] sm:$0xff]  ;;  %v2267_v21 = vld [vmem:[#allocation7 + $0x8] sm:$0xff]  ;;  %vm1025_vm10 = vcmask 64512   ;;  %vm1097_vm11 = vcmask 1042432  }
  0x6e   :  { %220 = vmatpush1.msra.mxu0 %v151_v7  ;;  %1626 = vmatpush3.msra.mxu1 %v2231_v15  ;;  %v2273_v22 = vld [vmem:[#allocation7] sm:$0xff]  ;;  %v163_v26 = vld [vmem:[%s2664_s3] sm:$0xf] }
  0x6f   :  { %1467 = vmatmul.mubr.msk.f32.vlgmr.msra.gmra.mxu0 %vm185_vm0, %v150_v8  ;;  %286 = vmatprep.subr.mxu0 %v162_v9  ;;  %v168_v28 = vrot.slane %v163_v26, %v167_v25  ;;  %v172_v29 = vrot.slane %v163_v26, %v171_v27  ;;  %v176_v37 = vrot.slane %v163_v26, %v175_v30  ;;  %v2411_v54 = vld [vmem:[#allocation8] ss:$0 sm:$0xff]  ;;  %v2414_v59 = vld [vmem:[#allocation10] ss:$0 sm:$0xff] }
  0x70   :  { %287 = vmatpush1.msra.mxu0 %v161_v11  ;;  %324 = vmatprep.mubr.f32.mxu0 %v2067_v1  ;;  %v180_v40 = vrot.slane %v163_v26, %v179_v33 }
  0x71   :  { %288 = vmatprep.subr.mxu0 %v158_v12  ;;  %1627 = vmatprep.subr.mxu1 %v2067_v1 }
  0x72   :  { %289 = vmatpush1.msra.mxu0 %v157_v13  ;;  %1628 = vmatpush3.msra.mxu1 %v2237_v17 }
  0x73   :  { %290 = vmatprep.subr.mxu0 %v154_v14  ;;  %1629 = vmatprep.subr.mxu1 %v2067_v1 }
  0x74   :  { %291 = vmatpush1.msra.mxu0 %v153_v16  ;;  %1630 = vmatpush3.msra.mxu1 %v2244_v18 }
  0x75   :  { %1468 = vmatmul.mubr.msk.f32.vlgmr.msra.gmra.mxu0 %vm185_vm0, %v150_v8  ;;  %1604 = vmatprep.subr.mxu0 %v2067_v1 }
  0x76   :  { %1605 = vmatpush3.msra.mxu0 %v2213_v10  ;;  %1631 = vmatprep.subr.mxu1 %v2067_v1 }
  0x77   :  { %1606 = vmatprep.subr.mxu0 %v2067_v1  ;;  %1632 = vmatpush3.msra.mxu1 %v2249_v19 }
  0x78   :  { %1607 = vmatpush3.msra.mxu0 %v2231_v15  ;;  %1633 = vmatprep.subr.mxu1 %v2067_v1 }
  0x79   :  { %1608 = vmatprep.subr.mxu0 %v2067_v1  ;;  %1634 = vmatpush3.msra.mxu1 %v2262_v20 }
  0x7a   :  { %1609 = vmatpush3.msra.mxu0 %v2237_v17  ;;  %1635 = vmatprep.subr.mxu1 %v2067_v1 }
  0x7b   :  { %1610 = vmatprep.subr.mxu0 %v2067_v1  ;;  %1636 = vmatpush3.msra.mxu1 %v2267_v21 }
  0x7c   :  { %1611 = vmatpush3.msra.mxu0 %v2244_v18  ;;  %1637 = vmatprep.subr.mxu1 %v2067_v1 }
  0x7d   :  { %1612 = vmatprep.subr.mxu0 %v2067_v1  ;;  %1638 = vmatpush3.msra.mxu1 %v2273_v22 }
  0x7e   :  { %1613 = vmatpush3.msra.mxu0 %v2249_v19  ;;  %1620 = vmatprep.mubr.msk.f32.mxu0 %vm2068_vm1, %v2067_v1 }
  0x7f   :  { %1614 = vmatprep.subr.mxu0 %v2067_v1  ;;  %1661 = vmatprep.subr.mxu1 %v2067_v1 }
  0x80   :  { %1615 = vmatpush3.msra.mxu0 %v2262_v20 }
  0x81   :  { %1616 = vmatprep.subr.mxu0 %v2067_v1 }
  0x82   :  { %1617 = vmatpush3.msra.mxu0 %v2267_v21 }
  0x83   :  { %1618 = vmatprep.subr.mxu0 %v2067_v1 }
  0x84   :  { %1619 = vmatpush3.msra.mxu0 %v2273_v22 }
  0x85   :  { %1642 = vmatprep.subr.mxu0 %v2067_v1 }
 0x12f   :  { %v255_v31 = vpop.f32.mrf.mxu0 }
 0x130   :  { %v256_v32 = vadd.f32 %v255_v31, %v168_v28 }
 0x131   :  { %v257_v34 = vpop.f32.mrf.mxu0 }
 0x132   :  { %v331_v35 = vmul.f32 0.01, %v256_v32  ;;  %v258_v36 = vadd.f32 %v257_v34, %v172_v29 }
 0x134   :  { %v332_v38 = vmul.f32 0.01, %v258_v36  ;;  %v335_v39 = vmax.f32 %v256_v32, %v331_v35  ;;  %v1479_v35 = vld [vmem:[#allocation2] ss:$0 sm:$0xff] }
 0x135   :  { %v326_v41 = vpop.f32.mrf.mxu0 }
 0x136   :  { %441 = vrot.lane.b32.xlu0 %v335_v39, %s2069_s15  ;;  %1621 = vmatmul.mubr.msk.f32.vlgmr.msra.gmra.mxu0 %vm355_vm2, %v335_v39  ;;  %v327_v42 = vadd.f32 %v326_v41, %v176_v37  ;;  %v336_v44 = vmax.f32 %v258_v36, %v332_v38 }
 0x137   :  { %1643 = vmatpush3.msra.mxu0 %v2213_v10  ;;  %1658 = vmatprep.mubr.msk.f32.mxu0 %vm2068_vm1, %v2067_v1  ;;  %v328_v43 = vpop.f32.mrf.mxu0 }
 0x138   :  { %1644 = vmatprep.subr.mxu0 %v2067_v1  ;;  %v333_v45 = vmul.f32 0.01, %v327_v42  ;;  %v329_v46 = vadd.f32 %v328_v43, %v180_v40 }
 0x139   :  { %1645 = vmatpush3.msra.mxu0 %v2231_v15 }
 0x13a   :  { %1646 = vmatprep.subr.mxu0 %v2067_v1  ;;  %600 = vrot.lane.b32.xlu0 %v336_v44, %s2069_s15  ;;  %v334_v47 = vmul.f32 0.01, %v329_v46  ;;  %v337_v48 = vmax.f32 %v327_v42, %v333_v45 }
 0x13b   :  { %1647 = vmatpush3.msra.mxu0 %v2237_v17 }
 0x13c   :  { %1648 = vmatprep.subr.mxu0 %v2067_v1  ;;  %v338_v49 = vmax.f32 %v329_v46, %v334_v47  ;;  %759 = vrot.lane.b32.xlu1 %v337_v48, %s2069_s15 }
 0x13d   :  { %1649 = vmatpush3.msra.mxu0 %v2244_v18 }
 0x13e   :  { %1650 = vmatprep.subr.mxu0 %v2067_v1 }
 0x13f   :  { %1651 = vmatpush3.msra.mxu0 %v2249_v19 }
 0x140   :  { %1652 = vmatprep.subr.mxu0 %v2067_v1  ;;  %918 = vrot.lane.b32.xlu1 %v338_v49, %s2069_s15 }
 0x141   :  { %1653 = vmatpush3.msra.mxu0 %v2262_v20 }
 0x142   :  { %1654 = vmatprep.subr.mxu0 %v2067_v1 }
 0x143   :  { %1655 = vmatpush3.msra.mxu0 %v2267_v21 }
 0x144   :  { %1656 = vmatprep.subr.mxu0 %v2067_v1 }
 0x145   :  { %1657 = vmatpush3.msra.mxu0 %v2273_v22 }
 0x146   :  { %1659 = vmatmul.mubr.msk.f32.vlgmr.msra.gmra.mxu0 %vm355_vm2, %v336_v44  ;;  %1680 = vmatprep.subr.mxu0 %v2067_v1 }
 0x147   :  { %1681 = vmatpush3.msra.mxu0 %v2213_v10  ;;  %1696 = vmatprep.mubr.msk.f32.mxu0 %vm2068_vm1, %v2067_v1 }
 0x148   :  { %1682 = vmatprep.subr.mxu0 %v2067_v1 }
 0x149   :  { %1683 = vmatpush3.msra.mxu0 %v2231_v15 }
 0x14a   :  { %1684 = vmatprep.subr.mxu0 %v2067_v1 }
 0x14b   :  { %1685 = vmatpush3.msra.mxu0 %v2237_v17 }
 0x14c   :  { %1686 = vmatprep.subr.mxu0 %v2067_v1 }
 0x14d   :  { %1687 = vmatpush3.msra.mxu0 %v2244_v18 }
 0x14e   :  { %1688 = vmatprep.subr.mxu0 %v2067_v1 }
 0x14f   :  { %1689 = vmatpush3.msra.mxu0 %v2249_v19 }
 0x150   :  { %1690 = vmatprep.subr.mxu0 %v2067_v1 }
 0x151   :  { %1691 = vmatpush3.msra.mxu0 %v2262_v20 }
 0x152   :  { %1692 = vmatprep.subr.mxu0 %v2067_v1 }
 0x153   :  { %1693 = vmatpush3.msra.mxu0 %v2267_v21 }
 0x154   :  { %1694 = vmatprep.subr.mxu0 %v2067_v1 }
 0x155   :  { %1695 = vmatpush3.msra.mxu0 %v2273_v22 }
 0x156   :  { %1697 = vmatmul.mubr.msk.f32.vlgmr.msra.gmra.mxu0 %vm355_vm2, %v337_v48  ;;  %1718 = vmatprep.subr.mxu0 %v2067_v1 }
 0x157   :  { %1719 = vmatpush3.msra.mxu0 %v2213_v10  ;;  %1734 = vmatprep.mubr.msk.f32.mxu0 %vm2068_vm1, %v2067_v1 }
 0x158   :  { %1720 = vmatprep.subr.mxu0 %v2067_v1 }
 0x159   :  { %1721 = vmatpush3.msra.mxu0 %v2231_v15 }
 0x15a   :  { %1722 = vmatprep.subr.mxu0 %v2067_v1 }
 0x15b   :  { %1723 = vmatpush3.msra.mxu0 %v2237_v17 }
 0x15c   :  { %1724 = vmatprep.subr.mxu0 %v2067_v1 }
 0x15d   :  { %1725 = vmatpush3.msra.mxu0 %v2244_v18 }
 0x15e   :  { %1726 = vmatprep.subr.mxu0 %v2067_v1 }
 0x15f   :  { %1727 = vmatpush3.msra.mxu0 %v2249_v19 }
 0x160   :  { %1728 = vmatprep.subr.mxu0 %v2067_v1 }
 0x161   :  { %1729 = vmatpush3.msra.mxu0 %v2262_v20 }
 0x162   :  { %1730 = vmatprep.subr.mxu0 %v2067_v1 }
 0x163   :  { %1731 = vmatpush3.msra.mxu0 %v2267_v21 }
 0x164   :  { %1732 = vmatprep.subr.mxu0 %v2067_v1 }
 0x165   :  { %1733 = vmatpush3.msra.mxu0 %v2273_v22 }
 0x166   :  { %1735 = vmatmul.mubr.msk.f32.vlgmr.msra.gmra.mxu0 %vm355_vm2, %v338_v49  ;;  %1756 = vmatprep.subr.mxu0 %v2067_v1 }
 0x167   :  { %1758 = vmatprep.mubr.msk.f32.mxu0 %vm2068_vm1, %v2067_v1 }
 0x1a8   :  { %v442_v50 = vpop.permute.xlu0 %441 }
 0x1a9   :  { %1640 = vmatmul.mubr.msk.f32.vlgmr.msra.gmra.mxu1 %vm355_vm2, %v442_v50 }
 0x1aa   :  { %1662 = vmatpush3.msra.mxu1 %v2213_v10  ;;  %1677 = vmatprep.mubr.msk.f32.mxu1 %vm2068_vm1, %v2067_v1 }
 0x1ab   :  { %1663 = vmatprep.subr.mxu1 %v2067_v1 }
 0x1ac   :  { %1664 = vmatpush3.msra.mxu1 %v2231_v15  ;;  %v601_v51 = vpop.permute.xlu0 %600 }
 0x1ad   :  { %1665 = vmatprep.subr.mxu1 %v2067_v1 }
 0x1ae   :  { %1666 = vmatpush3.msra.mxu1 %v2237_v17  ;;  %v760_v52 = vpop.permute.xlu1 %759 }
 0x1af   :  { %1667 = vmatprep.subr.mxu1 %v2067_v1 }
 0x1b0   :  { %1668 = vmatpush3.msra.mxu1 %v2244_v18 }
 0x1b1   :  { %1669 = vmatprep.subr.mxu1 %v2067_v1 }
 0x1b2   :  { %1670 = vmatpush3.msra.mxu1 %v2249_v19  ;;  %v919_v53 = vpop.permute.xlu1 %918 }
 0x1b3   :  { %1671 = vmatprep.subr.mxu1 %v2067_v1 }
 0x1b4   :  { %1672 = vmatpush3.msra.mxu1 %v2262_v20 }
 0x1b5   :  { %1673 = vmatprep.subr.mxu1 %v2067_v1 }
 0x1b6   :  { %1674 = vmatpush3.msra.mxu1 %v2267_v21 }
 0x1b7   :  { %1675 = vmatprep.subr.mxu1 %v2067_v1 }
 0x1b8   :  { %1676 = vmatpush3.msra.mxu1 %v2273_v22 }
 0x1b9   :  { %1678 = vmatmul.mubr.msk.f32.vlgmr.msra.gmra.mxu1 %vm355_vm2, %v601_v51  ;;  %1699 = vmatprep.subr.mxu1 %v2067_v1 }
 0x1ba   :  { %1700 = vmatpush3.msra.mxu1 %v2213_v10  ;;  %1715 = vmatprep.mubr.msk.f32.mxu1 %vm2068_vm1, %v2067_v1 }
 0x1bb   :  { %1701 = vmatprep.subr.mxu1 %v2067_v1 }
 0x1bc   :  { %1702 = vmatpush3.msra.mxu1 %v2231_v15 }
 0x1bd   :  { %1703 = vmatprep.subr.mxu1 %v2067_v1 }
 0x1be   :  { %1704 = vmatpush3.msra.mxu1 %v2237_v17 }
 0x1bf   :  { %1705 = vmatprep.subr.mxu1 %v2067_v1 }
 0x1c0   :  { %1706 = vmatpush3.msra.mxu1 %v2244_v18 }
 0x1c1   :  { %1707 = vmatprep.subr.mxu1 %v2067_v1 }
 0x1c2   :  { %1708 = vmatpush3.msra.mxu1 %v2249_v19 }
 0x1c3   :  { %1709 = vmatprep.subr.mxu1 %v2067_v1 }
 0x1c4   :  { %1710 = vmatpush3.msra.mxu1 %v2262_v20 }
 0x1c5   :  { %1711 = vmatprep.subr.mxu1 %v2067_v1 }
 0x1c6   :  { %1712 = vmatpush3.msra.mxu1 %v2267_v21 }
 0x1c7   :  { %1713 = vmatprep.subr.mxu1 %v2067_v1 }
 0x1c8   :  { %1714 = vmatpush3.msra.mxu1 %v2273_v22 }
 0x1c9   :  { %1716 = vmatmul.mubr.msk.f32.vlgmr.msra.gmra.mxu1 %vm355_vm2, %v760_v52  ;;  %1737 = vmatprep.subr.mxu1 %v2067_v1 }
 0x1ca   :  { %1738 = vmatpush3.msra.mxu1 %v2213_v10  ;;  %1753 = vmatprep.mubr.msk.f32.mxu1 %vm2068_vm1, %v2067_v1 }
 0x1cb   :  { %1739 = vmatprep.subr.mxu1 %v2067_v1 }
 0x1cc   :  { %1740 = vmatpush3.msra.mxu1 %v2231_v15 }
 0x1cd   :  { %1741 = vmatprep.subr.mxu1 %v2067_v1 }
 0x1ce   :  { %1742 = vmatpush3.msra.mxu1 %v2237_v17 }
 0x1cf   :  { %1743 = vmatprep.subr.mxu1 %v2067_v1 }
 0x1d0   :  { %1744 = vmatpush3.msra.mxu1 %v2244_v18  ;;  %v2070_v18 = vmov 0  }
 0x1d1   :  { %1745 = vmatprep.subr.mxu1 %v2067_v1  ;;  %1871 = vset.pattern.permute.xlu1 %v2070_v18 }
 0x1d2   :  { %1746 = vmatpush3.msra.mxu1 %v2249_v19  ;;  %1872 = vset.pattern.permute.xlu0 %v2070_v18  ;;  %v2071_v18 = vmov 1  }
 0x1d3   :  { %1747 = vmatprep.subr.mxu1 %v2067_v1 }
 0x1d4   :  { %1748 = vmatpush3.msra.mxu1 %v2262_v20 }
 0x1d5   :  { %1749 = vmatprep.subr.mxu1 %v2067_v1 }
 0x1d6   :  { %1750 = vmatpush3.msra.mxu1 %v2267_v21 }
 0x1d7   :  { %1751 = vmatprep.subr.mxu1 %v2067_v1 }
 0x1d8   :  { %1752 = vmatpush3.msra.mxu1 %v2273_v22 }
 0x1d9   :  { %1754 = vmatmul.mubr.msk.f32.vlgmr.msra.gmra.mxu1 %vm355_vm2, %v919_v53  ;;  %1761 = vmatprep.subr.mxu1 %v2067_v1 }
 0x1da   :  { %1793 = vmatprep.mubr.msk.f32.mxu1 %vm2068_vm1, %v2067_v1 }
 0x1f6   :  { %v425_v55 = vpop.f32.mrf.mxu0 }
 0x1f7   :  { %v426_v56 = vadd.f32 %v2411_v54, %v425_v55 }
 0x1f8   :  { %v1622_v57 = vpop.f32.mrf.mxu0 }
 0x1f9   :  { %v429_v58 = vmul.f32 0.01, %v426_v56 }
 0x1fb   :  { %v2416_v60 = vmax.f32 %v426_v56, %v429_v58 }
 0x1fd   :  { %v437_v61 = vmul.f32 %v2414_v59, %v2416_v60 }
 0x1ff   :  { %v438_v62 = vsel %vm355_vm2, %v437_v61, 0.0 }
 0x200   :  { %439 = vadd.xlane.f32.xlu0 %v438_v62 }
 0x206   :  { %v590_v63 = vpop.f32.mrf.mxu0 }
 0x207   :  { %v591_v0 = vadd.f32 %v2411_v54, %v590_v63 }
 0x208   :  { %v1660_v2 = vpop.f32.mrf.mxu0 }
 0x209   :  { %v594_v3 = vmul.f32 0.01, %v591_v0 }
 0x20b   :  { %v2422_v4 = vmax.f32 %v591_v0, %v594_v3 }
 0x20d   :  { %v596_v5 = vmul.f32 %v2414_v59, %v2422_v4 }
 0x20f   :  { %v597_v6 = vsel %vm355_vm2, %v596_v5, 0.0 }
 0x210   :  { %598 = vadd.xlane.f32.xlu0 %v597_v6 }
 0x216   :  { %v749_v7 = vpop.f32.mrf.mxu0 }
 0x217   :  { %v750_v8 = vadd.f32 %v2411_v54, %v749_v7 }
 0x218   :  { %v1698_v9 = vpop.f32.mrf.mxu0 }
 0x219   :  { %v753_v10 = vmul.f32 0.01, %v750_v8 }
 0x21b   :  { %v2428_v11 = vmax.f32 %v750_v8, %v753_v10  ;;  %v1086_v10 = vld [vmem:[#allocation5] sm:$0x7] }
 0x21c   :  { %1757 = vmatpush3.msk.msra.mxu0 %vm1097_vm11, %v1086_v10 }
 0x21d   :  { %v755_v12 = vmul.f32 %v2414_v59, %v2428_v11  ;;  %1796 = vmatprep.subr.mxu0 %v2067_v1 }
 0x21f   :  { %v756_v13 = vsel %vm355_vm2, %v755_v12, 0.0  ;;  %v1085_v12 = vld [vmem:[%s2662_s1] sm:$0xff] }
 0x220   :  { %757 = vadd.xlane.f32.xlu1 %v756_v13  ;;  %1759 = vmatmul.mubr.msk.f32.vlgmr.msra.gmra.mxu0 %vm1002_vm5, %v1085_v12 }
 0x221   :  { %1828 = vmatprep.mubr.msk.f32.mxu0 %vm2068_vm1, %v2067_v1 }
 0x226   :  { %v908_v14 = vpop.f32.mrf.mxu0 }
 0x227   :  { %v909_v15 = vadd.f32 %v2411_v54, %v908_v14 }
 0x228   :  { %v1736_v16 = vpop.f32.mrf.mxu0 }
 0x229   :  { %v912_v17 = vmul.f32 0.01, %v909_v15 }
 0x22b   :  { %v2434_v19 = vmax.f32 %v909_v15, %v912_v17 }
 0x22d   :  { %v914_v20 = vmul.f32 %v2414_v59, %v2434_v19 }
 0x22f   :  { %v915_v21 = vsel %vm355_vm2, %v914_v20, 0.0 }
 0x230   :  { %916 = vadd.xlane.f32.xlu1 %v915_v21 }
 0x269   :  { %v511_v22 = vpop.f32.mrf.mxu1 }
 0x26a   :  { %v512_v23 = vadd.f32 %v2411_v54, %v511_v22 }
 0x26b   :  { %v1641_v24 = vpop.f32.mrf.mxu1 }
 0x26c   :  { %v515_v25 = vmul.f32 0.01, %v512_v23 }
 0x26e   :  { %v2440_v26 = vmax.f32 %v512_v23, %v515_v25  ;;  %v1193_v25 = vld [vmem:[%s2671_s10 + $0x78] sm:$0xff] }
 0x26f   :  { %1762 = vmatpush3.msra.mxu1 %v1193_v25 }
 0x270   :  { %v517_v27 = vmul.f32 %v2414_v59, %v2440_v26  ;;  %1763 = vmatprep.subr.mxu1 %v2067_v1 }
 0x272   :  { %v518_v28 = vsel %vm355_vm2, %v517_v27, 0.0  ;;  %v1192_v27 = vld [vmem:[%s2671_s10 + $0x70] sm:$0xff] }
 0x273   :  { %519 = vadd.xlane.f32.xlu1 %v518_v28  ;;  %1764 = vmatpush3.msra.mxu1 %v1192_v27  ;;  %v1191_v28 = vld [vmem:[%s2671_s10 + $0x68] sm:$0xff] }
 0x274   :  { %1765 = vmatprep.subr.mxu1 %v2067_v1 }
 0x275   :  { %1766 = vmatpush3.msra.mxu1 %v1191_v28 }
 0x276   :  { %1767 = vmatprep.subr.mxu1 %v2067_v1 }
 0x279   :  { %v670_v29 = vpop.f32.mrf.mxu1 }
 0x27a   :  { %v671_v30 = vadd.f32 %v2411_v54, %v670_v29  ;;  %v2072_v29 = vmov 2  }
 0x27b   :  { %v1679_v31 = vpop.f32.mrf.mxu1 }
 0x27c   :  { %v674_v32 = vmul.f32 0.01, %v671_v30  ;;  %v2073_v31 = vmov 7  }
 0x27e   :  { %v2446_v33 = vmax.f32 %v671_v30, %v674_v32  ;;  %v1190_v30 = vld [vmem:[%s2671_s10 + $0x60] sm:$0xff]  ;;  %v1189_v32 = vld [vmem:[%s2671_s10 + $0x58] sm:$0xff] }
 0x27f   :  { %1768 = vmatpush3.msra.mxu1 %v1190_v30 }
 0x280   :  { %v676_v34 = vmul.f32 %v2414_v59, %v2446_v33  ;;  %1769 = vmatprep.subr.mxu1 %v2067_v1 }
 0x281   :  { %1770 = vmatpush3.msra.mxu1 %v1189_v32  ;;  %v1373_v32 = vld [vmem:[%s2675_s14 + $0x28] sm:$0xff] }
 0x282   :  { %v677_v36 = vsel %vm355_vm2, %v676_v34, 0.0  ;;  %v1188_v34 = vld [vmem:[%s2671_s10 + $0x50] sm:$0xff]  ;;  %1771 = vmatprep.subr.mxu1 %v2067_v1 }
 0x283   :  { %678 = vadd.xlane.f32.xlu0 %v677_v36  ;;  %1772 = vmatpush3.msra.mxu1 %v1188_v34  ;;  %v1187_v36 = vld [vmem:[%s2671_s10 + $0x48] sm:$0xff]  ;;  %v1372_v34 = vld [vmem:[%s2675_s14 + $0x20] sm:$0xff] }
 0x284   :  { %1019 = vperm.xlu1 %1871, %v1479_v35   ;;  %v2074_v35 = vmov 3   ;;  %1773 = vmatprep.subr.mxu1 %v2067_v1 }
 0x285   :  { %1774 = vmatpush3.msra.mxu1 %v1187_v36 }
 0x286   :  { %1775 = vmatprep.subr.mxu1 %v2067_v1 }
 0x288   :  { %1873 = vset.pattern.permute.xlu1 %v2071_v18 }
 0x289   :  { %v829_v37 = vpop.f32.mrf.mxu1  ;;  %v440_v52 = vpop.xlane.xlu0 %439 }
 0x28a   :  { %v830_v38 = vadd.f32 %v2411_v54, %v829_v37  ;;  %v1186_v37 = vld [vmem:[%s2671_s10 + $0x40] sm:$0xff] }
 0x28b   :  { %v1717_v39 = vpop.f32.mrf.mxu1  ;;  %1776 = vmatpush3.msra.mxu1 %v1186_v37 }
 0x28c   :  { %v833_v40 = vmul.f32 0.01, %v830_v38  ;;  %1777 = vmatprep.subr.mxu1 %v2067_v1  ;;  %v1185_v39 = vld [vmem:[%s2671_s10 + $0x38] sm:$0xff] }
 0x28d   :  { %1778 = vmatpush3.msra.mxu1 %v1185_v39 }
 0x28e   :  { %v2452_v41 = vmax.f32 %v830_v38, %v833_v40  ;;  %v2075_v38 = vmov 4   ;;  %1779 = vmatprep.subr.mxu1 %v2067_v1  ;;  %v1184_v40 = vld [vmem:[%s2671_s10 + $0x30] sm:$0xff] }
 0x28f   :  { %1780 = vmatpush3.msra.mxu1 %v1184_v40 }
 0x290   :  { %v835_v42 = vmul.f32 %v2414_v59, %v2452_v41  ;;  %1781 = vmatprep.subr.mxu1 %v2067_v1 }
 0x292   :  { %v836_v43 = vsel %vm355_vm2, %v835_v42, 0.0  ;;  %v1183_v42 = vld [vmem:[%s2671_s10 + $0x28] sm:$0xff] }
 0x293   :  { %837 = vadd.xlane.f32.xlu0 %v836_v43  ;;  %v2076_v43 = vmov 5   ;;  %1782 = vmatpush3.msra.mxu1 %v1183_v42  ;;  %v1371_v42 = vld [vmem:[%s2675_s14 + $0x18] sm:$0xff] }
 0x294   :  { %1783 = vmatprep.subr.mxu1 %v2067_v1 }
 0x299   :  { %v988_v44 = vpop.f32.mrf.mxu1  ;;  %v599_v55 = vpop.xlane.xlu0 %598 }
 0x29a   :  { %v989_v45 = vadd.f32 %v2411_v54, %v988_v44  ;;  %v1480_v44 = vld [vmem:[%s2666_s5] ss:$0 sm:$0xff] }
 0x29b   :  { %v1755_v46 = vpop.f32.mrf.mxu1 }
 0x29c   :  { %v992_v47 = vmul.f32 0.01, %v989_v45 }
 0x29e   :  { %v2458_v48 = vmax.f32 %v989_v45, %v992_v47  ;;  %v1182_v45 = vld [vmem:[%s2671_s10 + $0x20] sm:$0xff]  ;;  %v1181_v47 = vld [vmem:[%s2671_s10 + $0x18] sm:$0xff] }
 0x29f   :  { %1784 = vmatpush3.msra.mxu1 %v1182_v45  ;;  %v1368_v45 = vld [vmem:[%s2675_s14] sm:$0xff] }
 0x2a0   :  { %v994_v49 = vmul.f32 %v2414_v59, %v2458_v48  ;;  %1785 = vmatprep.subr.mxu1 %v2067_v1 }
 0x2a1   :  { %1786 = vmatpush3.msra.mxu1 %v1181_v47 }
 0x2a2   :  { %v995_v50 = vsel %vm355_vm2, %v994_v49, 0.0  ;;  %v2077_v49 = vmov 6   ;;  %1787 = vmatprep.subr.mxu1 %v2067_v1 }
 0x2a3   :  { %996 = vadd.xlane.f32.xlu0 %v995_v50  ;;  %v1180_v50 = vld [vmem:[%s2671_s10 + $0x10] sm:$0xff] }
 0x2a4   :  { %1788 = vmatpush3.msra.mxu1 %v1180_v50 }
 0x2a5   :  { %1789 = vmatprep.subr.mxu1 %v2067_v1 }
 0x2a9   :  { %v758_v51 = vpop.xlane.xlu1 %757 }
 0x2b9   :  { %v917_v53 = vpop.xlane.xlu1 %916 }
 0x2e0   :  { %v1167_v20 = vpop.f32.mrf.mxu0 }
 0x2e1   :  { %v1168_v46 = vadd.f32 %v1480_v44, %v1167_v20  ;;  %v1369_v44 = vld [vmem:[%s2675_s14 + $0x8] sm:$0xff] }
 0x2e2   :  { %v1760_v21 = vpop.f32.mrf.mxu0 }
 0x2fc   :  { %v520_v56 = vpop.xlane.xlu1 %519 }
 0x2fd   :  { %v999_v57 = vsel %vm998_vm3, %v440_v52, %v520_v56  ;;  %v1179_v52 = vld [vmem:[%s2671_s10 + $0x8] sm:$0xff]  ;;  %v1288_v56 = vld [vmem:[%s2673_s12 + $0x78] sm:$0xff] }
 0x2fe   :  { %v1001_v58 = vsel %vm1000_vm4, %v999_v57, %v599_v55  ;;  %1790 = vmatpush3.msra.mxu1 %v1179_v52  ;;  %v1287_v57 = vld [vmem:[%s2673_s12 + $0x70] sm:$0xff]  ;;  %1797 = vmatpush3.msra.mxu0 %v1288_v56 }
 0x2ff   :  { %1791 = vmatprep.subr.mxu1 %v2067_v1  ;;  %1798 = vmatprep.subr.mxu0 %v2067_v1 }
 0x300   :  { %v1020_v0 = vpop.permute.xlu1 %1019  ;;  %1799 = vmatpush3.msra.mxu0 %v1287_v57 }
 0x301   :  { %1800 = vmatprep.subr.mxu0 %v2067_v1 }
 0x30c   :  { %v679_v54 = vpop.xlane.xlu0 %678 }
 0x30d   :  { %v1003_v61 = vsel %vm1002_vm5, %v1001_v58, %v679_v54  ;;  %v1286_v54 = vld [vmem:[%s2673_s12 + $0x68] sm:$0xff]  ;;  %v1285_v58 = vld [vmem:[%s2673_s12 + $0x60] sm:$0xff] }
 0x30e   :  { %v1005_v59 = vsel %vm1004_vm6, %v1003_v61, %v758_v51  ;;  %v1171_v51 = vmul.f32 0.01, %v1168_v46  ;;  %1801 = vmatpush3.msra.mxu0 %v1286_v54  ;;  %v1284_v61 = vld [vmem:[%s2673_s12 + $0x58] sm:$0xff] }
 0x30f   :  { %1802 = vmatprep.subr.mxu0 %v2067_v1 }
 0x310   :  { %v1172_v55 = vmax.f32 %v1168_v46, %v1171_v51  ;;  %1803 = vmatpush3.msra.mxu0 %v1285_v58  ;;  %v1484_v46 = vld [vmem:[#allocation13] ss:$0 sm:$0xff] }
 0x311   :  { %1804 = vmatprep.subr.mxu0 %v2067_v1 }
 0x312   :  { %1805 = vmatpush3.msra.mxu0 %v1284_v61 }
 0x313   :  { %1806 = vmatprep.subr.mxu0 %v2067_v1 }
 0x31c   :  { %v838_v62 = vpop.xlane.xlu0 %837 }
 0x31d   :  { %v1007_v63 = vsel %vm1006_vm7, %v1005_v59, %v838_v62  ;;  %v1283_v62 = vld [vmem:[%s2673_s12 + $0x50] sm:$0xff]  ;;  %v1282_v59 = vld [vmem:[%s2673_s12 + $0x48] sm:$0xff] }
 0x31e   :  { %v1009_v3 = vsel %vm1008_vm8, %v1007_v63, %v917_v53  ;;  %v1178_v53 = vld [vmem:[%s2671_s10] sm:$0xff]  ;;  %1807 = vmatpush3.msra.mxu0 %v1283_v62 }
 0x31f   :  { %1792 = vmatpush3.msra.mxu1 %v1178_v53  ;;  %1808 = vmatprep.subr.mxu0 %v2067_v1  ;;  %v1281_v63 = vld [vmem:[%s2673_s12 + $0x40] sm:$0xff]  ;;  %v1485_v53 = vld [vmem:[#allocation14] ss:$0 sm:$0xff] }
 0x320   :  { %1831 = vmatprep.subr.mxu1 %v2067_v1  ;;  %1809 = vmatpush3.msra.mxu0 %v1282_v59 }
 0x321   :  { %1810 = vmatprep.subr.mxu0 %v2067_v1 }
 0x322   :  { %1811 = vmatpush3.msra.mxu0 %v1281_v63 }
 0x323   :  { %1812 = vmatprep.subr.mxu0 %v2067_v1 }
 0x32c   :  { %v997_v2 = vpop.xlane.xlu0 %996 }
 0x32d   :  { %v1011_v5 = vsel %vm1010_vm9, %v1009_v3, %v997_v2  ;;  %v1279_v2 = vld [vmem:[%s2673_s12 + $0x30] sm:$0xff]  ;;  %v1278_v3 = vld [vmem:[%s2673_s12 + $0x28] sm:$0xff] }
 0x32e   :  { %v1022_v6 = vadd.f32 %v1020_v0, %v1011_v5  ;;  %v1280_v0 = vld [vmem:[%s2673_s12 + $0x38] sm:$0xff]  ;;  %v1277_v5 = vld [vmem:[%s2673_s12 + $0x20] sm:$0xff] }
 0x32f   :  { %1813 = vmatpush3.msra.mxu0 %v1280_v0 }
 0x330   :  { %v1023_v7 = vmul.f32 0.01, %v1022_v6  ;;  %1814 = vmatprep.subr.mxu0 %v2067_v1 }
 0x331   :  { %1815 = vmatpush3.msra.mxu0 %v1279_v2 }
 0x332   :  { %v1024_v8 = vmax.f32 %v1022_v6, %v1023_v7  ;;  %1816 = vmatprep.subr.mxu0 %v2067_v1 }
 0x333   :  { %1817 = vmatpush3.msra.mxu0 %v1278_v3 }
 0x334   :  { %v1026_v9 = vsel %vm1025_vm10, %v1024_v8, -inf  ;;  %1818 = vmatprep.subr.mxu0 %v2067_v1 }
 0x335   :  { %1027 = vmax.xlane.f32.xlu0 %v1026_v9  ;;  %1819 = vmatpush3.msra.mxu0 %v1277_v5 }
 0x336   :  { %1820 = vmatprep.subr.mxu0 %v2067_v1 }
 0x3be   :  { %v1028_v13 = vpop.xlane.xlu0 %1027 }
 0x3bf   :  { %v1029_v14 = vsub.f32 %v1024_v8, %v1028_v13 }
 0x3c1   :  { %v1030_v15 = vmul.f32 1.442695, %v1029_v14 }
 0x3c3   :  { %1881 = vpow2.f32 %v1030_v15 }
 0x3d0   :  { %v1882_v16 = vpop.eup %1881 }
 0x3d1   :  { %v1032_v17 = vsel %vm1025_vm10, %v1882_v16, 0.0 }
 0x3d2   :  { %1033 = vadd.xlane.f32.xlu0 %v1032_v17 }
 0x45b   :  { %v1034_v22 = vpop.xlane.xlu0 %1033 }
 0x45c   :  { %1883 = vrcp.f32 %v1034_v22 }
 0x469   :  { %v1884_v23 = vpop.eup %1883 }
 0x46a   :  { %v2473_v24 = vmul.f32 %v1884_v23, %v1882_v16 }
 0x46c   :  { %1044 = vperm.xlu1 %1873, %v2473_v24   ;;  %1039 = vperm.xlu0 %1872, %v2473_v24  }
 0x470   :  { %1874 = vset.pattern.permute.xlu1 %v2072_v29  ;;  %1880 = vset.pattern.permute.xlu0 %v2073_v31 }
 0x471   :  { %1050 = vperm.xlu1 %1874, %v2473_v24  }
 0x475   :  { %1875 = vset.pattern.permute.xlu1 %v2074_v35  ;;  %v1483_v35 = vld [vmem:[#allocation11] ss:$0 sm:$0xff] }
 0x476   :  { %1056 = vperm.xlu1 %1875, %v2473_v24  }
 0x47a   :  { %1876 = vset.pattern.permute.xlu1 %v2075_v38 }
 0x47b   :  { %1062 = vperm.xlu1 %1876, %v2473_v24  }
 0x47f   :  { %1877 = vset.pattern.permute.xlu1 %v2076_v43  ;;  %v1370_v43 = vld [vmem:[%s2675_s14 + $0x10] sm:$0xff] }
 0x480   :  { %1068 = vperm.xlu1 %1877, %v2473_v24  }
 0x484   :  { %1878 = vset.pattern.permute.xlu1 %v2077_v49 }
 0x485   :  { %1074 = vperm.xlu1 %1878, %v2473_v24  }
 0x489   :  { %1879 = vset.pattern.permute.xlu1 %v2073_v31  ;;  %v1374_v31 = vld [vmem:[%s2675_s14 + $0x30] sm:$0xff] }
 0x48a   :  { %1080 = vperm.xlu1 %1879, %v2473_v24  }
 0x48e   :  { %1174 = vrot.lane.b32.xlu1 %v1172_v55, %s2069_s15 }
 0x4e7   :  { %v1045_v6 = vpop.permute.xlu1 %1044  ;;  %v1040_v9 = vpop.permute.xlu0 %1039 }
 0x4e8   :  { %v1047_v12 = vmul.f32 %v1045_v6, %v2440_v26  ;;  %v1042_v13 = vmul.f32 %v1040_v9, %v2416_v60 }
 0x4ea   :  { %v1048_v16 = vadd.f32 %v1047_v12, %v1042_v13 }
 0x4ec   :  { %v1051_v7 = vpop.permute.xlu1 %1050 }
 0x4ed   :  { %v1053_v14 = vmul.f32 %v1051_v7, %v2422_v4 }
 0x4ef   :  { %v1054_v18 = vadd.f32 %v1053_v14, %v1048_v16 }
 0x4f1   :  { %v1057_v8 = vpop.permute.xlu1 %1056 }
 0x4f2   :  { %v1059_v17 = vmul.f32 %v1057_v8, %v2446_v33  ;;  %v1274_v33 = vld [vmem:[%s2673_s12 + $0x8] sm:$0xff] }
 0x4f4   :  { %v1060_v21 = vadd.f32 %v1059_v17, %v1054_v18 }
 0x4f6   :  { %v1063_v10 = vpop.permute.xlu1 %1062 }
 0x4f7   :  { %v1065_v20 = vmul.f32 %v1063_v10, %v2428_v11  ;;  %v1276_v11 = vld [vmem:[%s2673_s12 + $0x18] sm:$0xff] }
 0x4f8   :  { %1821 = vmatpush3.msra.mxu0 %v1276_v11 }
 0x4f9   :  { %v1066_v24 = vadd.f32 %v1065_v20, %v1060_v21  ;;  %1822 = vmatprep.subr.mxu0 %v2067_v1 }
 0x4fb   :  { %v1069_v15 = vpop.permute.xlu1 %1068 }
 0x4fc   :  { %v1071_v22 = vmul.f32 %v1069_v15, %v2452_v41  ;;  %v1273_v41 = vld [vmem:[%s2673_s12] sm:$0xff] }
 0x4fe   :  { %v1072_v27 = vadd.f32 %v1071_v22, %v1066_v24 }
 0x500   :  { %v1075_v23 = vpop.permute.xlu1 %1074 }
 0x501   :  { %v1077_v25 = vmul.f32 %v1075_v23, %v2434_v19  ;;  %v1275_v19 = vld [vmem:[%s2673_s12 + $0x10] sm:$0xff] }
 0x502   :  { %1823 = vmatpush3.msra.mxu0 %v1275_v19 }
 0x503   :  { %v1078_v28 = vadd.f32 %v1077_v25, %v1072_v27  ;;  %1824 = vmatprep.subr.mxu0 %v2067_v1 }
 0x504   :  { %1825 = vmatpush3.msra.mxu0 %v1274_v33 }
 0x505   :  { %v1081_v26 = vpop.permute.xlu1 %1080  ;;  %1826 = vmatprep.subr.mxu0 %v2067_v1 }
 0x506   :  { %v1083_v60 = vmul.f32 %v1081_v26, %v2458_v48  ;;  %1827 = vmatpush3.msra.mxu0 %v1273_v41  ;;  %v1375_v48 = vld [vmem:[%s2675_s14 + $0x38] sm:$0xff] }
 0x508   :  { %v1084_v4 = vadd.f32 %v1083_v60, %v1078_v28 }
 0x509   :  { %v1175_v29 = vpop.permute.xlu1 %1174 }
 0x50a   :  { %v1177_v30 = vsel %vm355_vm2, %v1084_v4, %v1175_v29 }
 0x50b   :  { %1794 = vmatmul.mubr.f32.vlgmr.msra.gmra.mxu1 %v1177_v30 }
 0x50c   :  { %1847 = vmatprep.mubr.msk.f32.mxu1 %vm2068_vm1, %v2067_v1  ;;  %1832 = vmatpush3.msra.mxu1 %v1375_v48 }
 0x50d   :  { %1833 = vmatprep.subr.mxu1 %v2067_v1 }
 0x50e   :  { %1834 = vmatpush3.msra.mxu1 %v1374_v31 }
 0x50f   :  { %1835 = vmatprep.subr.mxu1 %v2067_v1 }
 0x510   :  { %1836 = vmatpush3.msra.mxu1 %v1373_v32 }
 0x511   :  { %1837 = vmatprep.subr.mxu1 %v2067_v1 }
 0x512   :  { %1838 = vmatpush3.msra.mxu1 %v1372_v34 }
 0x513   :  { %1839 = vmatprep.subr.mxu1 %v2067_v1 }
 0x514   :  { %1840 = vmatpush3.msra.mxu1 %v1371_v42 }
 0x515   :  { %1841 = vmatprep.subr.mxu1 %v2067_v1 }
 0x516   :  { %1842 = vmatpush3.msra.mxu1 %v1370_v43 }
 0x517   :  { %1843 = vmatprep.subr.mxu1 %v2067_v1 }
 0x518   :  { %1844 = vmatpush3.msra.mxu1 %v1369_v44 }
 0x519   :  { %1845 = vmatprep.subr.mxu1 %v2067_v1 }
 0x51a   :  { %1846 = vmatpush3.msra.mxu1 %v1368_v45 }
 0x5cb   :  { %v1267_v36 = vpop.f32.mrf.mxu1 }
 0x5cc   :  { %v1268_v37 = vadd.f32 %v1483_v35, %v1267_v36 }
 0x5cd   :  { %v1795_v38 = vpop.f32.mrf.mxu1 }
 0x5ce   :  { %v1271_v39 = vmul.f32 0.01, %v1268_v37 }
 0x5d0   :  { %v1272_v40 = vmax.f32 %v1268_v37, %v1271_v39 }
 0x5d2   :  { %1829 = vmatmul.mubr.f32.vlgmr.msra.gmra.mxu0 %v1272_v40 }
 0x692   :  { %v1362_v47 = vpop.f32.mrf.mxu0 }
 0x693   :  { %v1363_v49 = vadd.f32 %v1484_v46, %v1362_v47 }
 0x694   :  { %v1830_v50 = vpop.f32.mrf.mxu0 }
 0x695   :  { %v1366_v51 = vmul.f32 0.01, %v1363_v49 }
 0x697   :  { %v1367_v52 = vmax.f32 %v1363_v49, %v1366_v51 }
 0x699   :  { %1848 = vmatmul.mubr.msk.f32.vlgmr.msra.gmra.mxu1 %vm355_vm2, %v1367_v52 }
 0x759   :  { %v1452_v55 = vpop.f32.mrf.mxu1 }
 0x75a   :  { %v1453_v56 = vadd.f32 %v1485_v53, %v1452_v55 }
 0x75b   :  { %v1849_v57 = vpop.f32.mrf.mxu1 }
 0x75c   :  { %1885 = vtanh.f32 %v1453_v56 }
 0x769   :  { %v1886_v54 = vpop.eup %1885 }
 0x76a   :  { %1457 = vst.msk [vmem:[%s2677_s16] sm:$0xff] %vm1002_vm5, %v1886_v54 }
 0x76b   :  { %1462 = vsyncpa [#allocation4], 1 }
 0x76c   :  { %1463 = vsyncpa [#allocation6], 1 }
 0x76d   :  { %1464 = vsyncpa [#allocation9], 1 }
 0x76e   :  { %1465 = vsyncpa [#allocation12], 1 }
 0x76f   :  { %1466 = vsyncpa [#allocation15], 1 }

</bundles_post_ra>
